<compile_context>
chip_gen: v5e
topology: v5e:2x2
jax: 0.10.0
libtpu: 0.0.40
codegen_flags: <defaults>
</compile_context>

<pallas_src>
import functools

import jax
import jax.numpy as jnp
from jax.experimental import pallas as pl
from jax.experimental.pallas import tpu as pltpu


def _round_up(x: int, m: int) -> int:
    return ((x + m - 1) // m) * m


def _attention_kernel(pq_ref, pkT_ref, v_ref, mask_ref, keys_ref,
                      ctx_ref, attn_ref, *, ks_valid: int):
    """One (batch, q-tile) step: energy -> masked softmax -> context."""
    pq = pq_ref[0].astype(jnp.float32)      # (tq, H)     projected queries
    pkT = pkT_ref[0].astype(jnp.float32)    # (H, Ks_p)   projected keys (transposed)
    v = v_ref[...].astype(jnp.float32)      # (1, H)      energy-layer weight
    mask = mask_ref[0]                      # (tq, Ks_p)
    keys = keys_ref[0]                      # (Ks_p, Dk_p)

    tq, hidden = pq.shape
    ks_p = pkT.shape[1]

    # Additive energy with H as a (statically unrolled) reduction axis.  The
    # (tq, Ks_p) tile stays lane-dense; no 3-D temporary is materialized, so
    # peak live set is a few (tq, Ks_p) tiles regardless of H.  tanh on the
    # EUP is the binding slot; the per-h broadcasts ride in XLU/VPU slots.
    energy = jnp.zeros((tq, ks_p), jnp.float32)
    for h in range(hidden):
        e = pq[:, h:h + 1] + pkT[h:h + 1, :]            # (tq,1)+(1,Ks_p) -> (tq,Ks_p)
        energy = energy + jnp.tanh(e) * v[:, h:h + 1]   # FMA with scalar v[h]

    # masked_fill(mask == 0, -1e9); padded mask entries are 0 as well.
    energy = jnp.where(mask == 0, jnp.float32(-1.0e9), energy)

    # Numerically stable softmax over the key axis.  Padded key columns get an
    # exactly-zero weight so fully-masked rows renormalize over the *real* Ks
    # columns only (matches torch's -1e9 + softmax behaviour).
    m = jnp.max(energy, axis=-1, keepdims=True)
    p = jnp.exp(energy - m)
    if ks_valid < ks_p:
        col = jax.lax.broadcasted_iota(jnp.int32, (tq, ks_p), 1)
        p = jnp.where(col < ks_valid, p, jnp.float32(0.0))
    denom = jnp.sum(p, axis=-1, keepdims=True)
    # One reciprocal per row + cheap multiplies instead of a full-tile divide.
    # (approx=True would use the fast EUP vrcp; exact form keeps 2e-5 tol.)
    attn = p * pl.reciprocal(denom, approx=False)

    # context = attn @ keys on the MXU with f32 accumulation.  Operand dtype
    # follows the model dtype (bf16 inputs use the bf16 MXU path on v6e/v7x).
    ctx = jnp.dot(attn.astype(keys.dtype), keys,
                  preferred_element_type=jnp.float32)

    ctx_ref[0] = ctx.astype(ctx_ref.dtype)
    attn_ref[0] = attn.astype(attn_ref.dtype)


@jax.jit
def attention_mechanism(queries, keys, mask, wq, wk, v):
    """context, attention_weights = AttentionMechanism(queries, keys, mask)."""
    B, Qs, Dq = queries.shape
    _, Ks, Dk = keys.shape
    H = wq.shape[0]
    dtype = queries.dtype

    # ---- tiling / padding: lane-dense last dims (multiples of 128) ----------
    tq = 128 if Qs >= 128 else _round_up(Qs, 8)
    qs_p = _round_up(Qs, tq)
    ks_p = _round_up(Ks, 128)
    dk_p = _round_up(Dk, 128)

    q_pad = jnp.pad(queries, ((0, 0), (0, qs_p - Qs), (0, 0)))        # (B, Qs_p, Dq)
    k_seq = jnp.pad(keys, ((0, 0), (0, ks_p - Ks), (0, 0)))           # (B, Ks_p, Dk)
    k_pad = jnp.pad(k_seq, ((0, 0), (0, 0), (0, dk_p - Dk)))          # (B, Ks_p, Dk_p)
    if mask is None:
        mask = jnp.ones((B, Qs, Ks), dtype=dtype)
    m_pad = jnp.pad(mask, ((0, 0), (0, qs_p - Qs), (0, ks_p - Ks)))   # (B, Qs_p, Ks_p)

    # ---- hoisted projections: one big MXU matmul each (plain XLA) -----------
    prec = jax.lax.Precision.HIGHEST
    pq = jnp.einsum("bqd,hd->bqh", q_pad, wq, precision=prec)         # (B, Qs_p, H)
    pkT = jnp.einsum("bkd,hd->bhk", k_seq, wk, precision=prec)        # (B, H, Ks_p)

    grid = (B, qs_p // tq)
    grid_spec = pltpu.PrefetchScalarGridSpec(
        num_scalar_prefetch=0,
        grid=grid,
        in_specs=[
            pl.BlockSpec((1, tq, H), lambda b, qi: (b, qi, 0)),        # pq
            pl.BlockSpec((1, H, ks_p), lambda b, qi: (b, 0, 0)),       # pkT (const over qi -> no re-fetch)
            pl.BlockSpec((1, H), lambda b, qi: (0, 0)),                # v   (const)
            pl.BlockSpec((1, tq, ks_p), lambda b, qi: (b, qi, 0)),     # mask
            pl.BlockSpec((1, ks_p, dk_p), lambda b, qi: (b, 0, 0)),    # keys (const over qi)
        ],
        out_specs=[
            pl.BlockSpec((1, tq, dk_p), lambda b, qi: (b, qi, 0)),     # context
            pl.BlockSpec((1, tq, ks_p), lambda b, qi: (b, qi, 0)),     # attention weights
        ],
    )
    out_shape = (
        jax.ShapeDtypeStruct((B, qs_p, dk_p), dtype),
        jax.ShapeDtypeStruct((B, qs_p, ks_p), dtype),
    )

    # NOTE: for very long key sequences one would additionally tile Ks with a
    # flash-style running max/sum; at these sizes the whole (padded) Ks row
    # fits comfortably in VMEM, so a single-pass softmax is used.
    ctx_p, attn_p = pl.pallas_call(
        functools.partial(_attention_kernel, ks_valid=Ks),
        out_shape=out_shape,
        grid_spec=grid_spec,
        compiler_params=pltpu.CompilerParams(
            dimension_semantics=("parallel", "parallel"),
            vmem_limit_bytes=32 * 1024 * 1024,
        ),
    )(pq, pkT, v, m_pad, k_pad)

    # Strip padding back to the module's documented output shapes.
    return ctx_p[:, :Qs, :Dk], attn_p[:, :Qs, :Ks]


def _reference(queries, keys, mask, wq, wk, v):
    prec = jax.lax.Precision.HIGHEST
    pq = jnp.einsum("bqd,hd->bqh", queries, wq, precision=prec)
    pk = jnp.einsum("bkd,hd->bkh", keys, wk, precision=prec)
    t = jnp.tanh(pq[:, :, None, :] + pk[:, None, :, :])
    energy = jnp.einsum("bqkh,h->bqk", t, v[0], precision=prec)
    energy = jnp.where(mask == 0, -1.0e9, energy)
    attn = jax.nn.softmax(energy, axis=-1)
    ctx = jnp.einsum("bqk,bkd->bqd", attn, keys, precision=prec)
    return ctx, attn


if __name__ == "__main__":
    # Small shapes consistent with the module's forward.
    B, Qs, Ks = 2, 8, 8
    query_dim, key_dim, hidden_dim = 16, 16, 32

    key = jax.random.PRNGKey(0)
    k_q, k_k, k_wq, k_wk, k_v = jax.random.split(key, 5)

    queries = jax.random.normal(k_q, (B, Qs, query_dim), dtype=jnp.float32)
    keys = jax.random.normal(k_k, (B, Ks, key_dim), dtype=jnp.float32)

    # Deterministic parameter init mimicking nn.Linear's U(-1/sqrt(in), 1/sqrt(in)).
    wq = jax.random.uniform(k_wq, (hidden_dim, query_dim), jnp.float32,
                            -1.0 / query_dim ** 0.5, 1.0 / query_dim ** 0.5)
    wk = jax.random.uniform(k_wk, (hidden_dim, key_dim), jnp.float32,
                            -1.0 / key_dim ** 0.5, 1.0 / key_dim ** 0.5)
    v = jax.random.uniform(k_v, (1, hidden_dim), jnp.float32,
                           -1.0 / hidden_dim ** 0.5, 1.0 / hidden_dim ** 0.5)

    # Binary mask: batch 1 masks out the last two key positions.
    mask = jnp.ones((B, Qs, Ks), dtype=jnp.float32)
    mask = mask.at[1, :, Ks - 2:].set(0.0)

    ctx, attn = attention_mechanism(queries, keys, mask, wq, wk, v)
    jax.block_until_ready((ctx, attn))

    ctx_ref, attn_ref = _reference(queries, keys, mask, wq, wk, v)
    assert ctx.shape == (B, Qs, key_dim) and attn.shape == (B, Qs, Ks)
    assert jnp.allclose(ctx, ctx_ref, atol=2e-5, rtol=2e-5)
    assert jnp.allclose(attn, attn_ref, atol=2e-5, rtol=2e-5)

    print("KERNEL_OK")
</pallas_src>

<mosaic_0001>
module attributes {stable_mosaic.version = 11 : i64} {
  func.func @_attention_kernel(%arg0: i32, %arg1: i32, %arg2: memref<1x8x32xf32, #tpu.memory_space<vmem>>, %arg3: memref<1x32x128xf32, #tpu.memory_space<vmem>>, %arg4: memref<1x32xf32, #tpu.memory_space<vmem>>, %arg5: memref<1x8x128xf32, #tpu.memory_space<vmem>>, %arg6: memref<1x128x128xf32, #tpu.memory_space<vmem>>, %arg7: memref<1x8x128xf32, #tpu.memory_space<vmem>>, %arg8: memref<1x8x128xf32, #tpu.memory_space<vmem>>) attributes {dimension_semantics = [#tpu.dimension_semantics<parallel>, #tpu.dimension_semantics<parallel>], iteration_bounds = array<i64: 2, 1>, scalar_prefetch = 0 : i64, scratch_operands = 0 : i64, tpu.core_type = #tpu.core_type<tc>, window_params = [{transform_indices = @transform_0, window_bounds = array<i64: 1, 8, 32>}, {transform_indices = @transform_1, window_bounds = array<i64: 1, 32, 128>}, {pipeline_mode = #tpu.pipeline_mode<synchronous>, transform_indices = @transform_2, window_bounds = array<i64: 1, 32>}, {transform_indices = @transform_3, window_bounds = array<i64: 1, 8, 128>}, {transform_indices = @transform_4, window_bounds = array<i64: 1, 128, 128>}, {transform_indices = @transform_5, window_bounds = array<i64: 1, 8, 128>}, {transform_indices = @transform_6, window_bounds = array<i64: 1, 8, 128>}]} {
    %c0 = arith.constant 0 : index
    %c0_0 = arith.constant 0 : index
    %c0_1 = arith.constant 0 : index
    %0 = vector.load %arg2[%c0, %c0_0, %c0_1] : memref<1x8x32xf32, #tpu.memory_space<vmem>>, vector<1x8x32xf32>
    %1 = vector.shape_cast %0 : vector<1x8x32xf32> to vector<8x32xf32>
    %c0_2 = arith.constant 0 : index
    %c0_3 = arith.constant 0 : index
    %c0_4 = arith.constant 0 : index
    %2 = vector.load %arg3[%c0_2, %c0_3, %c0_4] : memref<1x32x128xf32, #tpu.memory_space<vmem>>, vector<1x32x128xf32>
    %3 = vector.shape_cast %2 : vector<1x32x128xf32> to vector<32x128xf32>
    %c0_5 = arith.constant 0 : index
    %c0_6 = arith.constant 0 : index
    %4 = vector.load %arg4[%c0_5, %c0_6] : memref<1x32xf32, #tpu.memory_space<vmem>>, vector<1x32xf32>
    %c0_7 = arith.constant 0 : index
    %c0_8 = arith.constant 0 : index
    %c0_9 = arith.constant 0 : index
    %5 = vector.load %arg5[%c0_7, %c0_8, %c0_9] : memref<1x8x128xf32, #tpu.memory_space<vmem>>, vector<1x8x128xf32>
    %6 = vector.shape_cast %5 : vector<1x8x128xf32> to vector<8x128xf32>
    %c0_10 = arith.constant 0 : index
    %c0_11 = arith.constant 0 : index
    %c0_12 = arith.constant 0 : index
    %7 = vector.load %arg6[%c0_10, %c0_11, %c0_12] : memref<1x128x128xf32, #tpu.memory_space<vmem>>, vector<1x128x128xf32>
    %8 = vector.shape_cast %7 : vector<1x128x128xf32> to vector<128x128xf32>
    %cst = arith.constant 0.000000e+00 : f32
    %9 = vector.broadcast %cst : f32 to vector<8x128xf32>
    %10 = vector.extract_strided_slice %1 {offsets = [0, 0], sizes = [8, 1], strides = [1, 1]} : vector<8x32xf32> to vector<8x1xf32>
    %11 = vector.extract_strided_slice %3 {offsets = [0, 0], sizes = [1, 128], strides = [1, 1]} : vector<32x128xf32> to vector<1x128xf32>
    %12 = vector.broadcast %10 : vector<8x1xf32> to vector<8x128xf32>
    %13 = vector.broadcast %11 : vector<1x128xf32> to vector<8x128xf32>
    %14 = arith.addf %12, %13 : vector<8x128xf32>
    %15 = math.tanh %14 : vector<8x128xf32>
    %16 = vector.extract_strided_slice %4 {offsets = [0, 0], sizes = [1, 1], strides = [1, 1]} : vector<1x32xf32> to vector<1x1xf32>
    %17 = vector.broadcast %16 : vector<1x1xf32> to vector<8x128xf32>
    %18 = arith.mulf %15, %17 : vector<8x128xf32>
    %19 = arith.addf %9, %18 : vector<8x128xf32>
    %20 = vector.extract_strided_slice %1 {offsets = [0, 1], sizes = [8, 1], strides = [1, 1]} : vector<8x32xf32> to vector<8x1xf32>
    %21 = vector.extract_strided_slice %3 {offsets = [1, 0], sizes = [1, 128], strides = [1, 1]} : vector<32x128xf32> to vector<1x128xf32>
    %22 = vector.broadcast %20 : vector<8x1xf32> to vector<8x128xf32>
    %23 = vector.broadcast %21 : vector<1x128xf32> to vector<8x128xf32>
    %24 = arith.addf %22, %23 : vector<8x128xf32>
    %25 = math.tanh %24 : vector<8x128xf32>
    %26 = vector.extract_strided_slice %4 {offsets = [0, 1], sizes = [1, 1], strides = [1, 1]} : vector<1x32xf32> to vector<1x1xf32>
    %27 = vector.broadcast %26 : vector<1x1xf32> to vector<8x128xf32>
    %28 = arith.mulf %25, %27 : vector<8x128xf32>
    %29 = arith.addf %19, %28 : vector<8x128xf32>
    %30 = vector.extract_strided_slice %1 {offsets = [0, 2], sizes = [8, 1], strides = [1, 1]} : vector<8x32xf32> to vector<8x1xf32>
    %31 = vector.extract_strided_slice %3 {offsets = [2, 0], sizes = [1, 128], strides = [1, 1]} : vector<32x128xf32> to vector<1x128xf32>
    %32 = vector.broadcast %30 : vector<8x1xf32> to vector<8x128xf32>
    %33 = vector.broadcast %31 : vector<1x128xf32> to vector<8x128xf32>
    %34 = arith.addf %32, %33 : vector<8x128xf32>
    %35 = math.tanh %34 : vector<8x128xf32>
    %36 = vector.extract_strided_slice %4 {offsets = [0, 2], sizes = [1, 1], strides = [1, 1]} : vector<1x32xf32> to vector<1x1xf32>
    %37 = vector.broadcast %36 : vector<1x1xf32> to vector<8x128xf32>
    %38 = arith.mulf %35, %37 : vector<8x128xf32>
    %39 = arith.addf %29, %38 : vector<8x128xf32>
    %40 = vector.extract_strided_slice %1 {offsets = [0, 3], sizes = [8, 1], strides = [1, 1]} : vector<8x32xf32> to vector<8x1xf32>
    %41 = vector.extract_strided_slice %3 {offsets = [3, 0], sizes = [1, 128], strides = [1, 1]} : vector<32x128xf32> to vector<1x128xf32>
    %42 = vector.broadcast %40 : vector<8x1xf32> to vector<8x128xf32>
    %43 = vector.broadcast %41 : vector<1x128xf32> to vector<8x128xf32>
    %44 = arith.addf %42, %43 : vector<8x128xf32>
    %45 = math.tanh %44 : vector<8x128xf32>
    %46 = vector.extract_strided_slice %4 {offsets = [0, 3], sizes = [1, 1], strides = [1, 1]} : vector<1x32xf32> to vector<1x1xf32>
    %47 = vector.broadcast %46 : vector<1x1xf32> to vector<8x128xf32>
    %48 = arith.mulf %45, %47 : vector<8x128xf32>
    %49 = arith.addf %39, %48 : vector<8x128xf32>
    %50 = vector.extract_strided_slice %1 {offsets = [0, 4], sizes = [8, 1], strides = [1, 1]} : vector<8x32xf32> to vector<8x1xf32>
    %51 = vector.extract_strided_slice %3 {offsets = [4, 0], sizes = [1, 128], strides = [1, 1]} : vector<32x128xf32> to vector<1x128xf32>
    %52 = vector.broadcast %50 : vector<8x1xf32> to vector<8x128xf32>
    %53 = vector.broadcast %51 : vector<1x128xf32> to vector<8x128xf32>
    %54 = arith.addf %52, %53 : vector<8x128xf32>
    %55 = math.tanh %54 : vector<8x128xf32>
    %56 = vector.extract_strided_slice %4 {offsets = [0, 4], sizes = [1, 1], strides = [1, 1]} : vector<1x32xf32> to vector<1x1xf32>
    %57 = vector.broadcast %56 : vector<1x1xf32> to vector<8x128xf32>
    %58 = arith.mulf %55, %57 : vector<8x128xf32>
    %59 = arith.addf %49, %58 : vector<8x128xf32>
    %60 = vector.extract_strided_slice %1 {offsets = [0, 5], sizes = [8, 1], strides = [1, 1]} : vector<8x32xf32> to vector<8x1xf32>
    %61 = vector.extract_strided_slice %3 {offsets = [5, 0], sizes = [1, 128], strides = [1, 1]} : vector<32x128xf32> to vector<1x128xf32>
    %62 = vector.broadcast %60 : vector<8x1xf32> to vector<8x128xf32>
    %63 = vector.broadcast %61 : vector<1x128xf32> to vector<8x128xf32>
    %64 = arith.addf %62, %63 : vector<8x128xf32>
    %65 = math.tanh %64 : vector<8x128xf32>
    %66 = vector.extract_strided_slice %4 {offsets = [0, 5], sizes = [1, 1], strides = [1, 1]} : vector<1x32xf32> to vector<1x1xf32>
    %67 = vector.broadcast %66 : vector<1x1xf32> to vector<8x128xf32>
    %68 = arith.mulf %65, %67 : vector<8x128xf32>
    %69 = arith.addf %59, %68 : vector<8x128xf32>
    %70 = vector.extract_strided_slice %1 {offsets = [0, 6], sizes = [8, 1], strides = [1, 1]} : vector<8x32xf32> to vector<8x1xf32>
    %71 = vector.extract_strided_slice %3 {offsets = [6, 0], sizes = [1, 128], strides = [1, 1]} : vector<32x128xf32> to vector<1x128xf32>
    %72 = vector.broadcast %70 : vector<8x1xf32> to vector<8x128xf32>
    %73 = vector.broadcast %71 : vector<1x128xf32> to vector<8x128xf32>
    %74 = arith.addf %72, %73 : vector<8x128xf32>
    %75 = math.tanh %74 : vector<8x128xf32>
    %76 = vector.extract_strided_slice %4 {offsets = [0, 6], sizes = [1, 1], strides = [1, 1]} : vector<1x32xf32> to vector<1x1xf32>
    %77 = vector.broadcast %76 : vector<1x1xf32> to vector<8x128xf32>
    %78 = arith.mulf %75, %77 : vector<8x128xf32>
    %79 = arith.addf %69, %78 : vector<8x128xf32>
    %80 = vector.extract_strided_slice %1 {offsets = [0, 7], sizes = [8, 1], strides = [1, 1]} : vector<8x32xf32> to vector<8x1xf32>
    %81 = vector.extract_strided_slice %3 {offsets = [7, 0], sizes = [1, 128], strides = [1, 1]} : vector<32x128xf32> to vector<1x128xf32>
    %82 = vector.broadcast %80 : vector<8x1xf32> to vector<8x128xf32>
    %83 = vector.broadcast %81 : vector<1x128xf32> to vector<8x128xf32>
    %84 = arith.addf %82, %83 : vector<8x128xf32>
    %85 = math.tanh %84 : vector<8x128xf32>
    %86 = vector.extract_strided_slice %4 {offsets = [0, 7], sizes = [1, 1], strides = [1, 1]} : vector<1x32xf32> to vector<1x1xf32>
    %87 = vector.broadcast %86 : vector<1x1xf32> to vector<8x128xf32>
    %88 = arith.mulf %85, %87 : vector<8x128xf32>
    %89 = arith.addf %79, %88 : vector<8x128xf32>
    %90 = vector.extract_strided_slice %1 {offsets = [0, 8], sizes = [8, 1], strides = [1, 1]} : vector<8x32xf32> to vector<8x1xf32>
    %91 = vector.extract_strided_slice %3 {offsets = [8, 0], sizes = [1, 128], strides = [1, 1]} : vector<32x128xf32> to vector<1x128xf32>
    %92 = vector.broadcast %90 : vector<8x1xf32> to vector<8x128xf32>
    %93 = vector.broadcast %91 : vector<1x128xf32> to vector<8x128xf32>
    %94 = arith.addf %92, %93 : vector<8x128xf32>
    %95 = math.tanh %94 : vector<8x128xf32>
    %96 = vector.extract_strided_slice %4 {offsets = [0, 8], sizes = [1, 1], strides = [1, 1]} : vector<1x32xf32> to vector<1x1xf32>
    %97 = vector.broadcast %96 : vector<1x1xf32> to vector<8x128xf32>
    %98 = arith.mulf %95, %97 : vector<8x128xf32>
    %99 = arith.addf %89, %98 : vector<8x128xf32>
    %100 = vector.extract_strided_slice %1 {offsets = [0, 9], sizes = [8, 1], strides = [1, 1]} : vector<8x32xf32> to vector<8x1xf32>
    %101 = vector.extract_strided_slice %3 {offsets = [9, 0], sizes = [1, 128], strides = [1, 1]} : vector<32x128xf32> to vector<1x128xf32>
    %102 = vector.broadcast %100 : vector<8x1xf32> to vector<8x128xf32>
    %103 = vector.broadcast %101 : vector<1x128xf32> to vector<8x128xf32>
    %104 = arith.addf %102, %103 : vector<8x128xf32>
    %105 = math.tanh %104 : vector<8x128xf32>
    %106 = vector.extract_strided_slice %4 {offsets = [0, 9], sizes = [1, 1], strides = [1, 1]} : vector<1x32xf32> to vector<1x1xf32>
    %107 = vector.broadcast %106 : vector<1x1xf32> to vector<8x128xf32>
    %108 = arith.mulf %105, %107 : vector<8x128xf32>
    %109 = arith.addf %99, %108 : vector<8x128xf32>
    %110 = vector.extract_strided_slice %1 {offsets = [0, 10], sizes = [8, 1], strides = [1, 1]} : vector<8x32xf32> to vector<8x1xf32>
    %111 = vector.extract_strided_slice %3 {offsets = [10, 0], sizes = [1, 128], strides = [1, 1]} : vector<32x128xf32> to vector<1x128xf32>
    %112 = vector.broadcast %110 : vector<8x1xf32> to vector<8x128xf32>
    %113 = vector.broadcast %111 : vector<1x128xf32> to vector<8x128xf32>
    %114 = arith.addf %112, %113 : vector<8x128xf32>
    %115 = math.tanh %114 : vector<8x128xf32>
    %116 = vector.extract_strided_slice %4 {offsets = [0, 10], sizes = [1, 1], strides = [1, 1]} : vector<1x32xf32> to vector<1x1xf32>
    %117 = vector.broadcast %116 : vector<1x1xf32> to vector<8x128xf32>
    %118 = arith.mulf %115, %117 : vector<8x128xf32>
    %119 = arith.addf %109, %118 : vector<8x128xf32>
    %120 = vector.extract_strided_slice %1 {offsets = [0, 11], sizes = [8, 1], strides = [1, 1]} : vector<8x32xf32> to vector<8x1xf32>
    %121 = vector.extract_strided_slice %3 {offsets = [11, 0], sizes = [1, 128], strides = [1, 1]} : vector<32x128xf32> to vector<1x128xf32>
    %122 = vector.broadcast %120 : vector<8x1xf32> to vector<8x128xf32>
    %123 = vector.broadcast %121 : vector<1x128xf32> to vector<8x128xf32>
    %124 = arith.addf %122, %123 : vector<8x128xf32>
    %125 = math.tanh %124 : vector<8x128xf32>
    %126 = vector.extract_strided_slice %4 {offsets = [0, 11], sizes = [1, 1], strides = [1, 1]} : vector<1x32xf32> to vector<1x1xf32>
    %127 = vector.broadcast %126 : vector<1x1xf32> to vector<8x128xf32>
    %128 = arith.mulf %125, %127 : vector<8x128xf32>
    %129 = arith.addf %119, %128 : vector<8x128xf32>
    %130 = vector.extract_strided_slice %1 {offsets = [0, 12], sizes = [8, 1], strides = [1, 1]} : vector<8x32xf32> to vector<8x1xf32>
    %131 = vector.extract_strided_slice %3 {offsets = [12, 0], sizes = [1, 128], strides = [1, 1]} : vector<32x128xf32> to vector<1x128xf32>
    %132 = vector.broadcast %130 : vector<8x1xf32> to vector<8x128xf32>
    %133 = vector.broadcast %131 : vector<1x128xf32> to vector<8x128xf32>
    %134 = arith.addf %132, %133 : vector<8x128xf32>
    %135 = math.tanh %134 : vector<8x128xf32>
    %136 = vector.extract_strided_slice %4 {offsets = [0, 12], sizes = [1, 1], strides = [1, 1]} : vector<1x32xf32> to vector<1x1xf32>
    %137 = vector.broadcast %136 : vector<1x1xf32> to vector<8x128xf32>
    %138 = arith.mulf %135, %137 : vector<8x128xf32>
    %139 = arith.addf %129, %138 : vector<8x128xf32>
    %140 = vector.extract_strided_slice %1 {offsets = [0, 13], sizes = [8, 1], strides = [1, 1]} : vector<8x32xf32> to vector<8x1xf32>
    %141 = vector.extract_strided_slice %3 {offsets = [13, 0], sizes = [1, 128], strides = [1, 1]} : vector<32x128xf32> to vector<1x128xf32>
    %142 = vector.broadcast %140 : vector<8x1xf32> to vector<8x128xf32>
    %143 = vector.broadcast %141 : vector<1x128xf32> to vector<8x128xf32>
    %144 = arith.addf %142, %143 : vector<8x128xf32>
    %145 = math.tanh %144 : vector<8x128xf32>
    %146 = vector.extract_strided_slice %4 {offsets = [0, 13], sizes = [1, 1], strides = [1, 1]} : vector<1x32xf32> to vector<1x1xf32>
    %147 = vector.broadcast %146 : vector<1x1xf32> to vector<8x128xf32>
    %148 = arith.mulf %145, %147 : vector<8x128xf32>
    %149 = arith.addf %139, %148 : vector<8x128xf32>
    %150 = vector.extract_strided_slice %1 {offsets = [0, 14], sizes = [8, 1], strides = [1, 1]} : vector<8x32xf32> to vector<8x1xf32>
    %151 = vector.extract_strided_slice %3 {offsets = [14, 0], sizes = [1, 128], strides = [1, 1]} : vector<32x128xf32> to vector<1x128xf32>
    %152 = vector.broadcast %150 : vector<8x1xf32> to vector<8x128xf32>
    %153 = vector.broadcast %151 : vector<1x128xf32> to vector<8x128xf32>
    %154 = arith.addf %152, %153 : vector<8x128xf32>
    %155 = math.tanh %154 : vector<8x128xf32>
    %156 = vector.extract_strided_slice %4 {offsets = [0, 14], sizes = [1, 1], strides = [1, 1]} : vector<1x32xf32> to vector<1x1xf32>
    %157 = vector.broadcast %156 : vector<1x1xf32> to vector<8x128xf32>
    %158 = arith.mulf %155, %157 : vector<8x128xf32>
    %159 = arith.addf %149, %158 : vector<8x128xf32>
    %160 = vector.extract_strided_slice %1 {offsets = [0, 15], sizes = [8, 1], strides = [1, 1]} : vector<8x32xf32> to vector<8x1xf32>
    %161 = vector.extract_strided_slice %3 {offsets = [15, 0], sizes = [1, 128], strides = [1, 1]} : vector<32x128xf32> to vector<1x128xf32>
    %162 = vector.broadcast %160 : vector<8x1xf32> to vector<8x128xf32>
    %163 = vector.broadcast %161 : vector<1x128xf32> to vector<8x128xf32>
    %164 = arith.addf %162, %163 : vector<8x128xf32>
    %165 = math.tanh %164 : vector<8x128xf32>
    %166 = vector.extract_strided_slice %4 {offsets = [0, 15], sizes = [1, 1], strides = [1, 1]} : vector<1x32xf32> to vector<1x1xf32>
    %167 = vector.broadcast %166 : vector<1x1xf32> to vector<8x128xf32>
    %168 = arith.mulf %165, %167 : vector<8x128xf32>
    %169 = arith.addf %159, %168 : vector<8x128xf32>
    %170 = vector.extract_strided_slice %1 {offsets = [0, 16], sizes = [8, 1], strides = [1, 1]} : vector<8x32xf32> to vector<8x1xf32>
    %171 = vector.extract_strided_slice %3 {offsets = [16, 0], sizes = [1, 128], strides = [1, 1]} : vector<32x128xf32> to vector<1x128xf32>
    %172 = vector.broadcast %170 : vector<8x1xf32> to vector<8x128xf32>
    %173 = vector.broadcast %171 : vector<1x128xf32> to vector<8x128xf32>
    %174 = arith.addf %172, %173 : vector<8x128xf32>
    %175 = math.tanh %174 : vector<8x128xf32>
    %176 = vector.extract_strided_slice %4 {offsets = [0, 16], sizes = [1, 1], strides = [1, 1]} : vector<1x32xf32> to vector<1x1xf32>
    %177 = vector.broadcast %176 : vector<1x1xf32> to vector<8x128xf32>
    %178 = arith.mulf %175, %177 : vector<8x128xf32>
    %179 = arith.addf %169, %178 : vector<8x128xf32>
    %180 = vector.extract_strided_slice %1 {offsets = [0, 17], sizes = [8, 1], strides = [1, 1]} : vector<8x32xf32> to vector<8x1xf32>
    %181 = vector.extract_strided_slice %3 {offsets = [17, 0], sizes = [1, 128], strides = [1, 1]} : vector<32x128xf32> to vector<1x128xf32>
    %182 = vector.broadcast %180 : vector<8x1xf32> to vector<8x128xf32>
    %183 = vector.broadcast %181 : vector<1x128xf32> to vector<8x128xf32>
    %184 = arith.addf %182, %183 : vector<8x128xf32>
    %185 = math.tanh %184 : vector<8x128xf32>
    %186 = vector.extract_strided_slice %4 {offsets = [0, 17], sizes = [1, 1], strides = [1, 1]} : vector<1x32xf32> to vector<1x1xf32>
    %187 = vector.broadcast %186 : vector<1x1xf32> to vector<8x128xf32>
    %188 = arith.mulf %185, %187 : vector<8x128xf32>
    %189 = arith.addf %179, %188 : vector<8x128xf32>
    %190 = vector.extract_strided_slice %1 {offsets = [0, 18], sizes = [8, 1], strides = [1, 1]} : vector<8x32xf32> to vector<8x1xf32>
    %191 = vector.extract_strided_slice %3 {offsets = [18, 0], sizes = [1, 128], strides = [1, 1]} : vector<32x128xf32> to vector<1x128xf32>
    %192 = vector.broadcast %190 : vector<8x1xf32> to vector<8x128xf32>
    %193 = vector.broadcast %191 : vector<1x128xf32> to vector<8x128xf32>
    %194 = arith.addf %192, %193 : vector<8x128xf32>
    %195 = math.tanh %194 : vector<8x128xf32>
    %196 = vector.extract_strided_slice %4 {offsets = [0, 18], sizes = [1, 1], strides = [1, 1]} : vector<1x32xf32> to vector<1x1xf32>
    %197 = vector.broadcast %196 : vector<1x1xf32> to vector<8x128xf32>
    %198 = arith.mulf %195, %197 : vector<8x128xf32>
    %199 = arith.addf %189, %198 : vector<8x128xf32>
    %200 = vector.extract_strided_slice %1 {offsets = [0, 19], sizes = [8, 1], strides = [1, 1]} : vector<8x32xf32> to vector<8x1xf32>
    %201 = vector.extract_strided_slice %3 {offsets = [19, 0], sizes = [1, 128], strides = [1, 1]} : vector<32x128xf32> to vector<1x128xf32>
    %202 = vector.broadcast %200 : vector<8x1xf32> to vector<8x128xf32>
    %203 = vector.broadcast %201 : vector<1x128xf32> to vector<8x128xf32>
    %204 = arith.addf %202, %203 : vector<8x128xf32>
    %205 = math.tanh %204 : vector<8x128xf32>
    %206 = vector.extract_strided_slice %4 {offsets = [0, 19], sizes = [1, 1], strides = [1, 1]} : vector<1x32xf32> to vector<1x1xf32>
    %207 = vector.broadcast %206 : vector<1x1xf32> to vector<8x128xf32>
    %208 = arith.mulf %205, %207 : vector<8x128xf32>
    %209 = arith.addf %199, %208 : vector<8x128xf32>
    %210 = vector.extract_strided_slice %1 {offsets = [0, 20], sizes = [8, 1], strides = [1, 1]} : vector<8x32xf32> to vector<8x1xf32>
    %211 = vector.extract_strided_slice %3 {offsets = [20, 0], sizes = [1, 128], strides = [1, 1]} : vector<32x128xf32> to vector<1x128xf32>
    %212 = vector.broadcast %210 : vector<8x1xf32> to vector<8x128xf32>
    %213 = vector.broadcast %211 : vector<1x128xf32> to vector<8x128xf32>
    %214 = arith.addf %212, %213 : vector<8x128xf32>
    %215 = math.tanh %214 : vector<8x128xf32>
    %216 = vector.extract_strided_slice %4 {offsets = [0, 20], sizes = [1, 1], strides = [1, 1]} : vector<1x32xf32> to vector<1x1xf32>
    %217 = vector.broadcast %216 : vector<1x1xf32> to vector<8x128xf32>
    %218 = arith.mulf %215, %217 : vector<8x128xf32>
    %219 = arith.addf %209, %218 : vector<8x128xf32>
    %220 = vector.extract_strided_slice %1 {offsets = [0, 21], sizes = [8, 1], strides = [1, 1]} : vector<8x32xf32> to vector<8x1xf32>
    %221 = vector.extract_strided_slice %3 {offsets = [21, 0], sizes = [1, 128], strides = [1, 1]} : vector<32x128xf32> to vector<1x128xf32>
    %222 = vector.broadcast %220 : vector<8x1xf32> to vector<8x128xf32>
    %223 = vector.broadcast %221 : vector<1x128xf32> to vector<8x128xf32>
    %224 = arith.addf %222, %223 : vector<8x128xf32>
    %225 = math.tanh %224 : vector<8x128xf32>
    %226 = vector.extract_strided_slice %4 {offsets = [0, 21], sizes = [1, 1], strides = [1, 1]} : vector<1x32xf32> to vector<1x1xf32>
    %227 = vector.broadcast %226 : vector<1x1xf32> to vector<8x128xf32>
    %228 = arith.mulf %225, %227 : vector<8x128xf32>
    %229 = arith.addf %219, %228 : vector<8x128xf32>
    %230 = vector.extract_strided_slice %1 {offsets = [0, 22], sizes = [8, 1], strides = [1, 1]} : vector<8x32xf32> to vector<8x1xf32>
    %231 = vector.extract_strided_slice %3 {offsets = [22, 0], sizes = [1, 128], strides = [1, 1]} : vector<32x128xf32> to vector<1x128xf32>
    %232 = vector.broadcast %230 : vector<8x1xf32> to vector<8x128xf32>
    %233 = vector.broadcast %231 : vector<1x128xf32> to vector<8x128xf32>
    %234 = arith.addf %232, %233 : vector<8x128xf32>
    %235 = math.tanh %234 : vector<8x128xf32>
    %236 = vector.extract_strided_slice %4 {offsets = [0, 22], sizes = [1, 1], strides = [1, 1]} : vector<1x32xf32> to vector<1x1xf32>
    %237 = vector.broadcast %236 : vector<1x1xf32> to vector<8x128xf32>
    %238 = arith.mulf %235, %237 : vector<8x128xf32>
    %239 = arith.addf %229, %238 : vector<8x128xf32>
    %240 = vector.extract_strided_slice %1 {offsets = [0, 23], sizes = [8, 1], strides = [1, 1]} : vector<8x32xf32> to vector<8x1xf32>
    %241 = vector.extract_strided_slice %3 {offsets = [23, 0], sizes = [1, 128], strides = [1, 1]} : vector<32x128xf32> to vector<1x128xf32>
    %242 = vector.broadcast %240 : vector<8x1xf32> to vector<8x128xf32>
    %243 = vector.broadcast %241 : vector<1x128xf32> to vector<8x128xf32>
    %244 = arith.addf %242, %243 : vector<8x128xf32>
    %245 = math.tanh %244 : vector<8x128xf32>
    %246 = vector.extract_strided_slice %4 {offsets = [0, 23], sizes = [1, 1], strides = [1, 1]} : vector<1x32xf32> to vector<1x1xf32>
    %247 = vector.broadcast %246 : vector<1x1xf32> to vector<8x128xf32>
    %248 = arith.mulf %245, %247 : vector<8x128xf32>
    %249 = arith.addf %239, %248 : vector<8x128xf32>
    %250 = vector.extract_strided_slice %1 {offsets = [0, 24], sizes = [8, 1], strides = [1, 1]} : vector<8x32xf32> to vector<8x1xf32>
    %251 = vector.extract_strided_slice %3 {offsets = [24, 0], sizes = [1, 128], strides = [1, 1]} : vector<32x128xf32> to vector<1x128xf32>
    %252 = vector.broadcast %250 : vector<8x1xf32> to vector<8x128xf32>
    %253 = vector.broadcast %251 : vector<1x128xf32> to vector<8x128xf32>
    %254 = arith.addf %252, %253 : vector<8x128xf32>
    %255 = math.tanh %254 : vector<8x128xf32>
    %256 = vector.extract_strided_slice %4 {offsets = [0, 24], sizes = [1, 1], strides = [1, 1]} : vector<1x32xf32> to vector<1x1xf32>
    %257 = vector.broadcast %256 : vector<1x1xf32> to vector<8x128xf32>
    %258 = arith.mulf %255, %257 : vector<8x128xf32>
    %259 = arith.addf %249, %258 : vector<8x128xf32>
    %260 = vector.extract_strided_slice %1 {offsets = [0, 25], sizes = [8, 1], strides = [1, 1]} : vector<8x32xf32> to vector<8x1xf32>
    %261 = vector.extract_strided_slice %3 {offsets = [25, 0], sizes = [1, 128], strides = [1, 1]} : vector<32x128xf32> to vector<1x128xf32>
    %262 = vector.broadcast %260 : vector<8x1xf32> to vector<8x128xf32>
    %263 = vector.broadcast %261 : vector<1x128xf32> to vector<8x128xf32>
    %264 = arith.addf %262, %263 : vector<8x128xf32>
    %265 = math.tanh %264 : vector<8x128xf32>
    %266 = vector.extract_strided_slice %4 {offsets = [0, 25], sizes = [1, 1], strides = [1, 1]} : vector<1x32xf32> to vector<1x1xf32>
    %267 = vector.broadcast %266 : vector<1x1xf32> to vector<8x128xf32>
    %268 = arith.mulf %265, %267 : vector<8x128xf32>
    %269 = arith.addf %259, %268 : vector<8x128xf32>
    %270 = vector.extract_strided_slice %1 {offsets = [0, 26], sizes = [8, 1], strides = [1, 1]} : vector<8x32xf32> to vector<8x1xf32>
    %271 = vector.extract_strided_slice %3 {offsets = [26, 0], sizes = [1, 128], strides = [1, 1]} : vector<32x128xf32> to vector<1x128xf32>
    %272 = vector.broadcast %270 : vector<8x1xf32> to vector<8x128xf32>
    %273 = vector.broadcast %271 : vector<1x128xf32> to vector<8x128xf32>
    %274 = arith.addf %272, %273 : vector<8x128xf32>
    %275 = math.tanh %274 : vector<8x128xf32>
    %276 = vector.extract_strided_slice %4 {offsets = [0, 26], sizes = [1, 1], strides = [1, 1]} : vector<1x32xf32> to vector<1x1xf32>
    %277 = vector.broadcast %276 : vector<1x1xf32> to vector<8x128xf32>
    %278 = arith.mulf %275, %277 : vector<8x128xf32>
    %279 = arith.addf %269, %278 : vector<8x128xf32>
    %280 = vector.extract_strided_slice %1 {offsets = [0, 27], sizes = [8, 1], strides = [1, 1]} : vector<8x32xf32> to vector<8x1xf32>
    %281 = vector.extract_strided_slice %3 {offsets = [27, 0], sizes = [1, 128], strides = [1, 1]} : vector<32x128xf32> to vector<1x128xf32>
    %282 = vector.broadcast %280 : vector<8x1xf32> to vector<8x128xf32>
    %283 = vector.broadcast %281 : vector<1x128xf32> to vector<8x128xf32>
    %284 = arith.addf %282, %283 : vector<8x128xf32>
    %285 = math.tanh %284 : vector<8x128xf32>
    %286 = vector.extract_strided_slice %4 {offsets = [0, 27], sizes = [1, 1], strides = [1, 1]} : vector<1x32xf32> to vector<1x1xf32>
    %287 = vector.broadcast %286 : vector<1x1xf32> to vector<8x128xf32>
    %288 = arith.mulf %285, %287 : vector<8x128xf32>
    %289 = arith.addf %279, %288 : vector<8x128xf32>
    %290 = vector.extract_strided_slice %1 {offsets = [0, 28], sizes = [8, 1], strides = [1, 1]} : vector<8x32xf32> to vector<8x1xf32>
    %291 = vector.extract_strided_slice %3 {offsets = [28, 0], sizes = [1, 128], strides = [1, 1]} : vector<32x128xf32> to vector<1x128xf32>
    %292 = vector.broadcast %290 : vector<8x1xf32> to vector<8x128xf32>
    %293 = vector.broadcast %291 : vector<1x128xf32> to vector<8x128xf32>
    %294 = arith.addf %292, %293 : vector<8x128xf32>
    %295 = math.tanh %294 : vector<8x128xf32>
    %296 = vector.extract_strided_slice %4 {offsets = [0, 28], sizes = [1, 1], strides = [1, 1]} : vector<1x32xf32> to vector<1x1xf32>
    %297 = vector.broadcast %296 : vector<1x1xf32> to vector<8x128xf32>
    %298 = arith.mulf %295, %297 : vector<8x128xf32>
    %299 = arith.addf %289, %298 : vector<8x128xf32>
    %300 = vector.extract_strided_slice %1 {offsets = [0, 29], sizes = [8, 1], strides = [1, 1]} : vector<8x32xf32> to vector<8x1xf32>
    %301 = vector.extract_strided_slice %3 {offsets = [29, 0], sizes = [1, 128], strides = [1, 1]} : vector<32x128xf32> to vector<1x128xf32>
    %302 = vector.broadcast %300 : vector<8x1xf32> to vector<8x128xf32>
    %303 = vector.broadcast %301 : vector<1x128xf32> to vector<8x128xf32>
    %304 = arith.addf %302, %303 : vector<8x128xf32>
    %305 = math.tanh %304 : vector<8x128xf32>
    %306 = vector.extract_strided_slice %4 {offsets = [0, 29], sizes = [1, 1], strides = [1, 1]} : vector<1x32xf32> to vector<1x1xf32>
    %307 = vector.broadcast %306 : vector<1x1xf32> to vector<8x128xf32>
    %308 = arith.mulf %305, %307 : vector<8x128xf32>
    %309 = arith.addf %299, %308 : vector<8x128xf32>
    %310 = vector.extract_strided_slice %1 {offsets = [0, 30], sizes = [8, 1], strides = [1, 1]} : vector<8x32xf32> to vector<8x1xf32>
    %311 = vector.extract_strided_slice %3 {offsets = [30, 0], sizes = [1, 128], strides = [1, 1]} : vector<32x128xf32> to vector<1x128xf32>
    %312 = vector.broadcast %310 : vector<8x1xf32> to vector<8x128xf32>
    %313 = vector.broadcast %311 : vector<1x128xf32> to vector<8x128xf32>
    %314 = arith.addf %312, %313 : vector<8x128xf32>
    %315 = math.tanh %314 : vector<8x128xf32>
    %316 = vector.extract_strided_slice %4 {offsets = [0, 30], sizes = [1, 1], strides = [1, 1]} : vector<1x32xf32> to vector<1x1xf32>
    %317 = vector.broadcast %316 : vector<1x1xf32> to vector<8x128xf32>
    %318 = arith.mulf %315, %317 : vector<8x128xf32>
    %319 = arith.addf %309, %318 : vector<8x128xf32>
    %320 = vector.extract_strided_slice %1 {offsets = [0, 31], sizes = [8, 1], strides = [1, 1]} : vector<8x32xf32> to vector<8x1xf32>
    %321 = vector.extract_strided_slice %3 {offsets = [31, 0], sizes = [1, 128], strides = [1, 1]} : vector<32x128xf32> to vector<1x128xf32>
    %322 = vector.broadcast %320 : vector<8x1xf32> to vector<8x128xf32>
    %323 = vector.broadcast %321 : vector<1x128xf32> to vector<8x128xf32>
    %324 = arith.addf %322, %323 : vector<8x128xf32>
    %325 = math.tanh %324 : vector<8x128xf32>
    %326 = vector.extract_strided_slice %4 {offsets = [0, 31], sizes = [1, 1], strides = [1, 1]} : vector<1x32xf32> to vector<1x1xf32>
    %327 = vector.broadcast %326 : vector<1x1xf32> to vector<8x128xf32>
    %328 = arith.mulf %325, %327 : vector<8x128xf32>
    %329 = arith.addf %319, %328 : vector<8x128xf32>
    %cst_13 = arith.constant 0.000000e+00 : f32
    %330 = vector.broadcast %cst_13 : f32 to vector<8x128xf32>
    %331 = arith.cmpf oeq, %6, %330 : vector<8x128xf32>
    %cst_14 = arith.constant -1.000000e+09 : f32
    %332 = vector.broadcast %cst_14 : f32 to vector<8x128xf32>
    %333 = arith.select %331, %332, %329 : vector<8x128xi1>, vector<8x128xf32>
    %cst_15 = arith.constant dense<0xFF800000> : vector<8xf32>
    %334 = vector.multi_reduction <maximumf>, %333, %cst_15 [1] : vector<8x128xf32> to vector<8xf32>
    %335 = vector.shape_cast %334 : vector<8xf32> to vector<8x1xf32>
    %336 = vector.broadcast %335 : vector<8x1xf32> to vector<8x128xf32>
    %337 = arith.subf %333, %336 : vector<8x128xf32>
    %338 = math.exp %337 : vector<8x128xf32>
    %339 = tpu.iota {dimensions = array<i32: 1>} : vector<8x128xi32>
    %c8_i32 = arith.constant 8 : i32
    %340 = vector.broadcast %c8_i32 : i32 to vector<8x128xi32>
    %341 = arith.cmpi slt, %339, %340 : vector<8x128xi32>
    %cst_16 = arith.constant 0.000000e+00 : f32
    %342 = vector.broadcast %cst_16 : f32 to vector<8x128xf32>
    %343 = arith.select %341, %338, %342 : vector<8x128xi1>, vector<8x128xf32>
    %cst_17 = arith.constant dense<0.000000e+00> : vector<8xf32>
    %344 = vector.multi_reduction <add>, %343, %cst_17 [1] : vector<8x128xf32> to vector<8xf32>
    %345 = vector.shape_cast %344 : vector<8xf32> to vector<8x1xf32>
    %346 = tpu.reciprocal %345 : vector<8x1xf32> -> vector<8x1xf32>
    %347 = vector.broadcast %346 : vector<8x1xf32> to vector<8x128xf32>
    %348 = arith.mulf %343, %347 : vector<8x128xf32>
    %cst_18 = arith.constant dense<0.000000e+00> : vector<8x128xf32>
    %349 = tpu.matmul %348, %8, %cst_18 {dimension_numbers = #tpu.dot_dimension_numbers<[1], [0], [0], [1], [0, 0, 1, 1], [], []>} : vector<8x128xf32>, vector<128x128xf32>, vector<8x128xf32> -> vector<8x128xf32>
    %c0_19 = arith.constant 0 : index
    %c0_20 = arith.constant 0 : index
    %c0_21 = arith.constant 0 : index
    %350 = vector.load %arg7[%c0_19, %c0_20, %c0_21] : memref<1x8x128xf32, #tpu.memory_space<vmem>>, vector<1x8x128xf32>
    %351 = vector.shape_cast %350 : vector<1x8x128xf32> to vector<8x128xf32>
    %352 = vector.shape_cast %349 : vector<8x128xf32> to vector<1x8x128xf32>
    tpu.vector_store %arg7[%c0_19, %c0_20, %c0_21], %352 {strides = array<i32>} : memref<1x8x128xf32, #tpu.memory_space<vmem>>, vector<1x8x128xf32>,
    %c0_22 = arith.constant 0 : index
    %c0_23 = arith.constant 0 : index
    %c0_24 = arith.constant 0 : index
    %353 = vector.load %arg8[%c0_22, %c0_23, %c0_24] : memref<1x8x128xf32, #tpu.memory_space<vmem>>, vector<1x8x128xf32>
    %354 = vector.shape_cast %353 : vector<1x8x128xf32> to vector<8x128xf32>
    %355 = vector.shape_cast %348 : vector<8x128xf32> to vector<1x8x128xf32>
    tpu.vector_store %arg8[%c0_22, %c0_23, %c0_24], %355 {strides = array<i32>} : memref<1x8x128xf32, #tpu.memory_space<vmem>>, vector<1x8x128xf32>,
    return
  }
  func.func @transform_0(%arg0: i32, %arg1: i32) -> (i32, i32, i32) {
    %c0_i32 = arith.constant 0 : i32
    %c0_i32_0 = arith.constant 0 : i32
    return %arg0, %arg1, %c0_i32 : i32, i32, i32
  }
  func.func @transform_1(%arg0: i32, %arg1: i32) -> (i32, i32, i32) {
    %c0_i32 = arith.constant 0 : i32
    %c0_i32_0 = arith.constant 0 : i32
    %c0_i32_1 = arith.constant 0 : i32
    return %arg0, %c0_i32, %c0_i32_0 : i32, i32, i32
  }
  func.func @transform_2(%arg0: i32, %arg1: i32) -> (i32, i32) {
    %c0_i32 = arith.constant 0 : i32
    %c0_i32_0 = arith.constant 0 : i32
    %c0_i32_1 = arith.constant 0 : i32
    return %c0_i32, %c0_i32_0 : i32, i32
  }
  func.func @transform_3(%arg0: i32, %arg1: i32) -> (i32, i32, i32) {
    %c0_i32 = arith.constant 0 : i32
    %c0_i32_0 = arith.constant 0 : i32
    return %arg0, %arg1, %c0_i32 : i32, i32, i32
  }
  func.func @transform_4(%arg0: i32, %arg1: i32) -> (i32, i32, i32) {
    %c0_i32 = arith.constant 0 : i32
    %c0_i32_0 = arith.constant 0 : i32
    %c0_i32_1 = arith.constant 0 : i32
    return %arg0, %c0_i32, %c0_i32_0 : i32, i32, i32
  }
  func.func @transform_5(%arg0: i32, %arg1: i32) -> (i32, i32, i32) {
    %c0_i32 = arith.constant 0 : i32
    %c0_i32_0 = arith.constant 0 : i32
    return %arg0, %arg1, %c0_i32 : i32, i32, i32
  }
  func.func @transform_6(%arg0: i32, %arg1: i32) -> (i32, i32, i32) {
    %c0_i32 = arith.constant 0 : i32
    %c0_i32_0 = arith.constant 0 : i32
    return %arg0, %arg1, %c0_i32 : i32, i32, i32
  }
}

</mosaic_0001>

<bundles_post_ra>
// kernel: attention_mechanism.1
= control target key start
LH: loop header
LB: loop body
LE: loop exit
PB: predicated region body
PF: predicated region fallthrough
CT: control target
= control target key end

     0   :  { %s1718_s0 = inlined_call_operand.vmem [shape: f32[2,8,32], index: 0, kind: input, shape index: {}]   ;;  %s1719_s1 = inlined_call_operand.vmem [shape: f32[2,32,128], index: 1, kind: input, shape index: {}]   ;;  %s1720_s2 = inlined_call_operand.vmem [shape: f32[1,32], index: 2, kind: input, shape index: {}]   ;;  %s1721_s3 = inlined_call_operand.vmem [shape: f32[2,8,128], index: 3, kind: input, shape index: {}]   ;;  %s1722_s4 = inlined_call_operand.vmem [shape: f32[2,128,128], index: 4, kind: input, shape index: {}]   ;;  %s1723_s5 = inlined_call_operand.hbm [shape: f32[2,8,128], index: 5, kind: output, shape index: {0}]   ;;  %s1724_s6 = inlined_call_operand.hbm [shape: f32[2,8,128], index: 6, kind: output, shape index: {1}]  }
   0x1   :  { %1726 = sst [smem:[#allocation8_spill]] %s1718_s0 }
   0x2   :  { %1727 = sst [smem:[#allocation9_spill]] %s1719_s1 }
   0x3   :  { %12 = vsyncpa [#allocation3], 0 }
   0x4   :  { %14 = vsyncpa [#allocation3 + $0x1], 0 }
   0x5   :  { %15 = vsyncpa [#allocation5], 0 }
   0x6   :  { %17 = vsyncpa [#allocation5 + $0x1], 0  ;;  %s1449_s21 = smov 0   ;;  %s1451_s22 = smov 0  }
   0x7   :  { %s1453_s23 = smov 0   ;;  %s1455_s24 = smov 0  }
   0x8   :  { %s1457_s25 = smov 0   ;;  %s1459_s26 = smov 0  }
   0x9 LB: > { %s1026_s27 = sadd.s32 4294967295, %s1380_s26   ;;  %s1027_s28 = sadd.s32 4294967294, %s1380_s26   ;;  %s1380_s26 = sphi %s1459_s26, %s23_s26   ;;  %s1376_s25 = sphi %s1457_s25, %s1737_s25   ;;  %s1372_s24 = sphi %s1455_s24, %s1736_s24   ;;  %s1368_s23 = sphi %s1453_s23, %s1735_s23   ;;  %s1364_s22 = sphi %s1451_s22, %s1734_s22   ;;  %s1360_s21 = sphi %s1449_s21, %s1733_s21  }
   0xa   : > { %s35_s29 = sadd.s32 1, %s1376_s25  ;;  %s173_s30 = sadd.s32 1, %s1368_s23 }
   0xb   : > { %p37_p0 = scmp.ge.s32.totalorder %s35_s29, 2  ;;  %p183_p1 = scmp.ne.s32.totalorder %s1368_s23, %s1364_s22 }
   0xc   : > { %p184_p2 = scmp.eq.s32.totalorder %s1026_s27, 1  ;;  %p189_p3 = scmp.ne.s32.totalorder %s1364_s22, %s1360_s21 }
   0xd   : > { %s1739_s29 = smov (%p37_p0, %s35_s29), 0  ;;  %p190_p5 = scmp.eq.s32.totalorder %s1027_s28, 1 }
   0xe   : > { %p1489_p4 = por %p184_p2, %p183_p1  ;;  %s168_s8 = ssub.s32 %s1376_s25, %s1739_s29 }
   0xf   : > { %p1030_p6 = scmp.ge.s32.totalorder %s1380_s26, 1  ;;  %p171_p7 = scmp.eq.s32.totalorder %s168_s8, 0 }
  0x10   : > { %p1496_p8 = por %p190_p5, %p189_p3  ;;  %p275_p9 = scmp.lt.s32.totalorder %s1380_s26, 3 }
  0x11   : > { %s1502_s10 = scalar_select %p171_p7, %s1368_s23, %s173_s30  }
  0x12   : > { %p276_p10 = pnand %p1030_p6, %p275_p9 }
  0x13   : > { %p329_p11 = scmp.lt.s32.totalorder (!%p276_p10), %s1372_s24, 1  ;;  %s1730_s0 = sld [smem:[#allocation8_spill]] (!%p276_p10) }
  0x14   : > { %279 = sbr.rel (%p276_p10) target bundleno = 759 (0x2f7), region = 40  ;;  %s1731_s1 = sld [smem:[#allocation9_spill]] (!%p276_p10) }
  0x15   : > { %s1041_s17 = sshll.u32 (!%p276_p10), %s1372_s24, 3 }
  0x16   : > { %s877_s20 = scalar_lea.hbm (!%p276_p10), %s1724_s6, %s1041_s17 }
  0x17   : > { %s881_s30 = sshll.u32 (!%p276_p10), %s877_s20, 4  ;;  %s882_s30 = int_to_ptr.hbm [resolvable:$true] %s881_s30 }
  0x19   : > { %v1382_v0 = vmov 1   ;;  %v1383_v1 = vmov 0   ;;  %s1506_s11 = scalar_select %p329_p11, %s1372_s24, 1  ;;  %v1384_v2 = vmov 2   ;;  %v1522_v4 = vld [vmem:[%s1720_s2] ss:$0 sm:$0xff] }
  0x1a   : > { %1140 = vset.pattern.permute.xlu1 %v1382_v0  ;;  %1139 = vset.pattern.permute.xlu0 %v1383_v1  ;;  %v1385_v5 = vmov 3   ;;  %v1386_v6 = vmov 4   ;;  %v1387_v7 = vmov 6   ;;  %v1388_v8 = vmov 5  }
  0x1b   : > { %1141 = vset.pattern.permute.xlu2 %v1384_v2  ;;  %s1033_s12 = sshll.u32 %s1506_s11, 3  ;;  %v1389_v9 = vmov 7   ;;  %v1390_v10 = vmov 10   ;;  %v1391_v11 = vmov 8   ;;  %v1392_v12 = vmov 9   ;;  %s1045_s18 = sshll.u32 %s1506_s11, 5 }
  0x1c   : > { %s335_s15 = scalar_lea.vmem %s1730_s0, %s1033_s12  ;;  %v1393_v13 = vmov 15   ;;  %v1394_v14 = vmov 11   ;;  %v1395_v15 = vmov 13   ;;  %v1396_v16 = vmov 12   ;;  %s1556_s27 = scalar_lea.vmem %s1731_s1, %s1045_s18 }
  0x1d   : > { %v1514_v3 = vld [vmem:[%s335_s15] sm:$0xff]  ;;  %v1397_v17 = vmov 20   ;;  %v1398_v18 = vmov 14   ;;  %v1399_v19 = vmov 18   ;;  %v1400_v22 = vmov 16   ;;  %s347_s8 = scalar_lea.vmem %s1721_s3, %s1033_s12  ;;  %s1046_s13 = sshll.u32 %s1506_s11, 7 }
  0x1e   : > { %393 = vperm.xlu1 %1140, %v1514_v3   ;;  %378 = vperm.xlu0 %1139, %v1514_v3   ;;  %v1560_v20 = vld [vmem:[%s1556_s27] sm:$0xff]  ;;  %v1401_v25 = vmov 17   ;;  %v1402_v32 = vmov 25   ;;  %v1403_v37 = vmov 19   ;;  %v1404_v40 = vmov 23   ;;  %s1641_s16 = scalar_lea.vmem %s1722_s4, %s1046_s13  ;;  %s1660_s11 = sand.u32 1, %s1364_s22  }
  0x1f   : > { %406 = vperm.xlu2 %1141, %v1514_v3   ;;  %v409_v21 = vperm.slane %v1560_v20, 2  ;;  %v396_v30 = vperm.slane %v1560_v20, 1  ;;  %v381_v31 = vperm.slane %v1560_v20, 0  ;;  %v448_v39 = vperm.slane %v1560_v20, 5  ;;  %s1725_s12 = sshll.u32 %s1660_s11, 3  ;;  %s1284_s13 = sshra.s32 %s882_s30, 4  ;;  %s1285_s13 = int_to_ptr.hbm [resolvable:$true] %s1284_s13 }
  0x20   : > { %v435_v45 = vperm.slane %v1560_v20, 4  ;;  %v1405_v49 = vmov 21   ;;  %v422_v53 = vperm.slane %v1560_v20, 3  ;;  %v1406_v59 = vmov 22   ;;  %s1286_s14 = scalar_lea.hbm %s1285_s13, 8  ;;  %p1291_p1 = scmp.lt.s32.totalorder %s1285_s13, %s1724_s6 }
  0x21   : > { %p1287_p12 = scmp.ne.s32.totalorder %s1285_s13, %s1286_s14 }
  0x23   : > { %p1288_p13 = pnand %p1287_p12, %p1489_p4 }
  0x25   : > { %p1289_p0 = pneg %p1288_p13 }
  0x26   : > { %400 = vperm.xlu1 %1140, %v1522_v4   ;;  %387 = vperm.xlu0 %1139, %v1522_v4  }
  0x27   : > { %413 = vperm.xlu2 %1141, %v1522_v4  }
  0x2e   : > { %1143 = vset.pattern.permute.xlu1 %v1385_v5  ;;  %1142 = vset.pattern.permute.xlu0 %v1385_v5 }
  0x2f   : > { %426 = vperm.xlu1 %1143, %v1522_v4   ;;  %419 = vperm.xlu0 %1142, %v1514_v3  }
  0x30   : > { %1144 = vset.pattern.permute.xlu2 %v1386_v6 }
  0x31   : > { %432 = vperm.xlu2 %1144, %v1514_v3  }
  0x37   : > { %1145 = vset.pattern.permute.xlu1 %v1386_v6  ;;  %1147 = vset.pattern.permute.xlu0 %v1387_v7 }
  0x38   : > { %439 = vperm.xlu1 %1145, %v1522_v4   ;;  %458 = vperm.xlu0 %1147, %v1514_v3  }
  0x39   : > { %1146 = vset.pattern.permute.xlu2 %v1388_v8 }
  0x3a   : > { %445 = vperm.xlu2 %1146, %v1514_v3  }
  0x40   : > { %1148 = vset.pattern.permute.xlu1 %v1389_v9  ;;  %1152 = vset.pattern.permute.xlu0 %v1390_v10 }
  0x41   : > { %471 = vperm.xlu1 %1148, %v1514_v3   ;;  %510 = vperm.xlu0 %1152, %v1514_v3  }
  0x42   : > { %1149 = vset.pattern.permute.xlu2 %v1391_v11 }
  0x43   : > { %484 = vperm.xlu2 %1149, %v1514_v3  }
  0x49   : > { %1150 = vset.pattern.permute.xlu1 %v1392_v12  ;;  %1157 = vset.pattern.permute.xlu0 %v1391_v11  ;;  %v1407_v11 = vmov 24  }
  0x4a   : > { %497 = vperm.xlu1 %1150, %v1514_v3   ;;  %491 = vperm.xlu0 %1157, %v1522_v4  }
  0x4b   : > { %1151 = vset.pattern.permute.xlu2 %v1388_v8 }
  0x4c   : > { %452 = vperm.xlu2 %1151, %v1522_v4  }
  0x52   : > { %1153 = vset.pattern.permute.xlu1 %v1387_v7  ;;  %1162 = vset.pattern.permute.xlu0 %v1393_v13 }
  0x53   : > { %465 = vperm.xlu1 %1153, %v1522_v4   ;;  %575 = vperm.xlu0 %1162, %v1514_v3  }
  0x54   : > { %1154 = vset.pattern.permute.xlu2 %v1394_v14 }
  0x55   : > { %523 = vperm.xlu2 %1154, %v1514_v3  }
  0x5b   : > { %1155 = vset.pattern.permute.xlu1 %v1389_v9  ;;  %1167 = vset.pattern.permute.xlu0 %v1395_v15 }
  0x5c   : > { %478 = vperm.xlu1 %1155, %v1522_v4   ;;  %556 = vperm.xlu0 %1167, %v1522_v4  }
  0x5d   : > { %1156 = vset.pattern.permute.xlu2 %v1396_v16 }
  0x5e   : > { %536 = vperm.xlu2 %1156, %v1514_v3  }
  0x64   : > { %1158 = vset.pattern.permute.xlu1 %v1395_v15  ;;  %1172 = vset.pattern.permute.xlu0 %v1397_v17 }
  0x65   : > { %549 = vperm.xlu1 %1158, %v1514_v3   ;;  %640 = vperm.xlu0 %1172, %v1514_v3  }
  0x66   : > { %1159 = vset.pattern.permute.xlu2 %v1392_v12  ;;  %v1592_v12 = vld [vmem:[%s1556_s27 + $0x8] sm:$0xff] }
  0x67   : > { %504 = vperm.xlu2 %1159, %v1522_v4   ;;  %v500_v15 = vperm.slane %v1592_v12, 1 }
  0x6d   : > { %1160 = vset.pattern.permute.xlu1 %v1398_v18  ;;  %1177 = vset.pattern.permute.xlu0 %v1399_v19 }
  0x6e   : > { %562 = vperm.xlu1 %1160, %v1514_v3   ;;  %621 = vperm.xlu0 %1177, %v1522_v4  }
  0x6f   : > { %1161 = vset.pattern.permute.xlu2 %v1390_v10  ;;  %v461_v10 = vperm.slane %v1560_v20, 6 }
  0x70   : > { %517 = vperm.xlu2 %1161, %v1522_v4  }
  0x76   : > { %1163 = vset.pattern.permute.xlu1 %v1394_v14  ;;  %1182 = vset.pattern.permute.xlu0 %v1402_v32 }
  0x77   : > { %530 = vperm.xlu1 %1163, %v1522_v4   ;;  %705 = vperm.xlu0 %1182, %v1514_v3  }
  0x78   : > { %1164 = vset.pattern.permute.xlu2 %v1400_v22 }
  0x79   : > { %588 = vperm.xlu2 %1164, %v1514_v3   ;;  %v407_v23 = vpop.permute.xlu2 %406 }
  0x7a   : > { %v410_v24 = vadd.f32 %v409_v21, %v407_v23  ;;  %v1409_v23 = vmov 26  }
  0x7c   : > { %1202 = vtanh.f32 %v410_v24  ;;  %v513_v24 = vperm.slane %v1592_v12, 2 }
  0x7f   : > { %1165 = vset.pattern.permute.xlu1 %v1396_v16  ;;  %1187 = vset.pattern.permute.xlu0 %v1404_v40 }
  0x80   : > { %543 = vperm.xlu1 %1165, %v1522_v4   ;;  %686 = vperm.xlu0 %1187, %v1522_v4  }
  0x81   : > { %1166 = vset.pattern.permute.xlu2 %v1401_v25  ;;  %v414_v26 = vpop.permute.xlu2 %413 }
  0x82   : > { %v1203_v27 = vpop.eup %1202  ;;  %601 = vperm.xlu2 %1166, %v1514_v3  }
  0x83   : > { %v416_v28 = vmul.f32 %v1203_v27, %v414_v26 }
  0x88   : > { %1168 = vset.pattern.permute.xlu1 %v1399_v19 }
  0x89   : > { %614 = vperm.xlu1 %1168, %v1514_v3  }
  0x8a   : > { %1169 = vset.pattern.permute.xlu2 %v1398_v18  ;;  %v1408_v18 = vmov 30  }
  0x8b   : > { %569 = vperm.xlu2 %1169, %v1522_v4   ;;  %v433_v29 = vpop.permute.xlu2 %432  ;;  %1192 = vset.pattern.permute.xlu0 %v1408_v18 }
  0x8c   : > { %v436_v52 = vadd.f32 %v435_v45, %v433_v29  ;;  %770 = vperm.xlu0 %1192, %v1514_v3   ;;  %v1413_v45 = vmov 28  }
  0x90   : > { %v394_v33 = vpop.permute.xlu1 %393  ;;  %v379_v34 = vpop.permute.xlu0 %378 }
  0x91   : > { %v397_v35 = vadd.f32 %v396_v30, %v394_v33  ;;  %v382_v36 = vadd.f32 %v381_v31, %v379_v34  ;;  %1170 = vset.pattern.permute.xlu1 %v1403_v37 }
  0x92   : > { %627 = vperm.xlu1 %1170, %v1514_v3  }
  0x93   : > { %1204 = vtanh.f32 %v397_v35  ;;  %1171 = vset.pattern.permute.xlu2 %v1393_v13 }
  0x94   : > { %1206 = vtanh.f32 %v382_v36  ;;  %582 = vperm.xlu2 %1171, %v1522_v4   ;;  %v446_v38 = vpop.permute.xlu2 %445 }
  0x95   : > { %v449_v47 = vadd.f32 %v448_v39, %v446_v38  ;;  %v1412_v38 = vmov 31  }
  0x97   : > { %1208 = vtanh.f32 %v449_v47 }
  0x98   : > { %v401_v41 = vpop.permute.xlu1 %400  ;;  %v388_v42 = vpop.permute.xlu0 %387  ;;  %1210 = vtanh.f32 %v436_v52 }
  0x99   : > { %v1205_v43 = vpop.eup %1204 }
  0x9a   : > { %v1207_v44 = vpop.eup %1206  ;;  %v403_v46 = vmul.f32 %v1205_v43, %v401_v41  ;;  %1173 = vset.pattern.permute.xlu1 %v1400_v22  ;;  %v474_v22 = vperm.slane %v1560_v20, 7 }
  0x9b   : > { %v390_v48 = vmul.f32 %v1207_v44, %v388_v42  ;;  %595 = vperm.xlu1 %1173, %v1522_v4  }
  0x9c   : > { %1174 = vset.pattern.permute.xlu2 %v1405_v49 }
  0x9d   : > { %v404_v50 = vadd.f32 %v403_v46, %v390_v48  ;;  %653 = vperm.xlu2 %1174, %v1514_v3   ;;  %v485_v51 = vpop.permute.xlu2 %484  ;;  %v1209_v58 = vpop.eup %1208 }
  0x9e   : > { %v1211_v62 = vpop.eup %1210 }
  0x9f   : > { %v417_v54 = vadd.f32 %v416_v28, %v404_v50  ;;  %v1410_v28 = vmov 29  }
  0xa0   : > { %1197 = vset.pattern.permute.xlu0 %v1410_v28 }
  0xa1   : > { %v427_v55 = vpop.permute.xlu1 %426  ;;  %v420_v56 = vpop.permute.xlu0 %419  ;;  %764 = vperm.xlu0 %1197, %v1522_v4  }
  0xa2   : > { %v423_v57 = vadd.f32 %v422_v53, %v420_v56 }
  0xa3   : > { %1175 = vset.pattern.permute.xlu1 %v1401_v25 }
  0xa4   : > { %1212 = vtanh.f32 %v423_v57  ;;  %608 = vperm.xlu1 %1175, %v1522_v4  }
  0xa5   : > { %1176 = vset.pattern.permute.xlu2 %v1406_v59 }
  0xa6   : > { %666 = vperm.xlu2 %1176, %v1514_v3   ;;  %v453_v60 = vpop.permute.xlu2 %452 }
  0xa7   : > { %v455_v61 = vmul.f32 %v1209_v58, %v453_v60  ;;  %v539_v58 = vperm.slane %v1592_v12, 4 }
  0xa9   : > { %1200 = vset.pattern.permute.xlu0 %v1412_v38 }
  0xaa   : > { %v1213_v63 = vpop.eup %1212  ;;  %v440_v0 = vpop.permute.xlu1 %439 }
  0xab   : > { %v429_v1 = vmul.f32 %v1213_v63, %v427_v55  ;;  %v442_v2 = vmul.f32 %v1211_v62, %v440_v0  ;;  %v459_v13 = vpop.permute.xlu0 %458 }
  0xac   : > { %1178 = vset.pattern.permute.xlu1 %v1404_v40  ;;  %v462_v14 = vadd.f32 %v461_v10, %v459_v13 }
  0xad   : > { %v430_v5 = vadd.f32 %v429_v1, %v417_v54  ;;  %679 = vperm.xlu1 %1178, %v1514_v3   ;;  %v526_v54 = vperm.slane %v1592_v12, 3 }
  0xae   : > { %1179 = vset.pattern.permute.xlu2 %v1403_v37  ;;  %1214 = vtanh.f32 %v462_v14  ;;  %v1411_v37 = vmov 27  }
  0xaf   : > { %v443_v6 = vadd.f32 %v442_v2, %v430_v5  ;;  %634 = vperm.xlu2 %1179, %v1522_v4   ;;  %v1586_v7 = vpop.permute.xlu2 %523 }
  0xb0   : > { %v527_v55 = vadd.f32 %v526_v54, %v1586_v7 }
  0xb1   : > { %v456_v8 = vadd.f32 %v455_v61, %v443_v6 }
  0xb3   : > { %v472_v9 = vpop.permute.xlu1 %471  ;;  %v511_v30 = vpop.permute.xlu0 %510 }
  0xb4   : > { %v1215_v25 = vpop.eup %1214  ;;  %v475_v29 = vadd.f32 %v474_v22, %v472_v9  ;;  %v514_v34 = vadd.f32 %v513_v24, %v511_v30 }
  0xb5   : > { %1180 = vset.pattern.permute.xlu1 %v1407_v11 }
  0xb6   : > { %692 = vperm.xlu1 %1180, %v1514_v3  }
  0xb7   : > { %1181 = vset.pattern.permute.xlu2 %v1397_v17  ;;  %v487_v17 = vperm.slane %v1592_v12, 0 }
  0xb8   : > { %647 = vperm.xlu2 %1181, %v1522_v4   ;;  %v1596_v16 = vpop.permute.xlu2 %536 }
  0xb9   : > { %v488_v26 = vadd.f32 %v487_v17, %v485_v51  ;;  %v540_v60 = vadd.f32 %v539_v58, %v1596_v16 }
  0xbc   : > { %v498_v19 = vpop.permute.xlu1 %497  ;;  %v492_v41 = vpop.permute.xlu0 %491 }
  0xbd   : > { %v501_v21 = vadd.f32 %v500_v15, %v498_v19 }
  0xbe   : > { %1183 = vset.pattern.permute.xlu1 %v1405_v49 }
  0xbf   : > { %1216 = vtanh.f32 %v501_v21  ;;  %660 = vperm.xlu1 %1183, %v1522_v4   ;;  %v578_v21 = vperm.slane %v1592_v12, 7 }
  0xc0   : > { %1184 = vset.pattern.permute.xlu2 %v1409_v23  ;;  %1218 = vtanh.f32 %v488_v26 }
  0xc1   : > { %718 = vperm.xlu2 %1184, %v1514_v3   ;;  %v505_v27 = vpop.permute.xlu2 %504  ;;  %1220 = vtanh.f32 %v475_v29 }
  0xc2   : > { %1222 = vtanh.f32 %v514_v34 }
  0xc3   : > { %1224 = vtanh.f32 %v527_v55 }
  0xc4   : > { %1226 = vtanh.f32 %v540_v60 }
  0xc5   : > { %v1217_v31 = vpop.eup %1216  ;;  %v466_v33 = vpop.permute.xlu1 %465 }
  0xc6   : > { %v507_v35 = vmul.f32 %v1217_v31, %v505_v27  ;;  %v468_v20 = vmul.f32 %v1215_v25, %v466_v33  ;;  %v1219_v39 = vpop.eup %1218  ;;  %v576_v62 = vpop.permute.xlu0 %575 }
  0xc7   : > { %1185 = vset.pattern.permute.xlu1 %v1406_v59  ;;  %v1221_v40 = vpop.eup %1220  ;;  %v494_v46 = vmul.f32 %v1219_v39, %v492_v41  ;;  %v552_v59 = vperm.slane %v1592_v12, 5  ;;  %v579_v24 = vadd.f32 %v578_v21, %v576_v62 }
  0xc8   : > { %v469_v36 = vadd.f32 %v468_v20, %v456_v8  ;;  %673 = vperm.xlu1 %1185, %v1522_v4   ;;  %v1223_v44 = vpop.eup %1222 }
  0xc9   : > { %1186 = vset.pattern.permute.xlu2 %v1411_v37  ;;  %v1225_v63 = vpop.eup %1224 }
  0xca   : > { %731 = vperm.xlu2 %1186, %v1514_v3   ;;  %v518_v48 = vpop.permute.xlu2 %517 }
  0xcb   : > { %v520_v50 = vmul.f32 %v1223_v44, %v518_v48 }
  0xce   : > { %v479_v42 = vpop.permute.xlu1 %478  ;;  %v557_v8 = vpop.permute.xlu0 %556 }
  0xcf   : > { %v481_v43 = vmul.f32 %v1221_v40, %v479_v42 }
  0xd0   : > { %1188 = vset.pattern.permute.xlu1 %v1413_v45 }
  0xd1   : > { %v482_v47 = vadd.f32 %v481_v43, %v469_v36  ;;  %744 = vperm.xlu1 %1188, %v1514_v3  }
  0xd2   : > { %1189 = vset.pattern.permute.xlu2 %v1407_v11 }
  0xd3   : > { %v495_v49 = vadd.f32 %v494_v46, %v482_v47  ;;  %699 = vperm.xlu2 %1189, %v1522_v4   ;;  %v589_v56 = vpop.permute.xlu2 %588 }
  0xd5   : > { %v508_v51 = vadd.f32 %v507_v35, %v495_v49 }
  0xd7   : > { %v521_v52 = vadd.f32 %v520_v50, %v508_v51  ;;  %v550_v53 = vpop.permute.xlu1 %549  ;;  %v641_v48 = vpop.permute.xlu0 %640 }
  0xd8   : > { %v553_v61 = vadd.f32 %v552_v59, %v550_v53 }
  0xd9   : > { %1190 = vset.pattern.permute.xlu1 %v1410_v28 }
  0xda   : > { %757 = vperm.xlu1 %1190, %v1514_v3   ;;  %1228 = vtanh.f32 %v553_v61 }
  0xdb   : > { %1191 = vset.pattern.permute.xlu2 %v1402_v32  ;;  %v565_v32 = vperm.slane %v1592_v12, 6 }
  0xdc   : > { %712 = vperm.xlu2 %1191, %v1522_v4   ;;  %v602_v2 = vpop.permute.xlu2 %601 }
  0xe0   : > { %v563_v57 = vpop.permute.xlu1 %562 }
  0xe1   : > { %v566_v1 = vadd.f32 %v565_v32, %v563_v57  ;;  %v622_v57 = vpop.permute.xlu0 %621 }
  0xe2   : > { %1193 = vset.pattern.permute.xlu1 %v1409_v23  ;;  %v356_v23 = vld [vmem:[%s1556_s27 + $0x10] sm:$0xff] }
  0xe3   : > { %725 = vperm.xlu1 %1193, %v1522_v4   ;;  %1230 = vtanh.f32 %v566_v1  ;;  %v591_v25 = vperm.slane %v356_v23, 0  ;;  %v604_v29 = vperm.slane %v356_v23, 1  ;;  %v617_v47 = vperm.slane %v356_v23, 2 }
  0xe4   : > { %1194 = vset.pattern.permute.xlu2 %v1412_v38  ;;  %1232 = vtanh.f32 %v579_v24  ;;  %v630_v50 = vperm.slane %v356_v23, 3  ;;  %v643_v51 = vperm.slane %v356_v23, 4  ;;  %v669_v58 = vperm.slane %v356_v23, 6 }
  0xe5   : > { %783 = vperm.xlu2 %1194, %v1514_v3   ;;  %v1227_v3 = vpop.eup %1226  ;;  %v570_v13 = vpop.permute.xlu2 %569  ;;  %v605_v33 = vadd.f32 %v604_v29, %v602_v2  ;;  %v682_v61 = vperm.slane %v356_v23, 7 }
  0xe6   : > { %v1229_v7 = vpop.eup %1228  ;;  %v644_v55 = vadd.f32 %v643_v51, %v641_v48 }
  0xe7   : > { %v559_v14 = vmul.f32 %v1229_v7, %v557_v8 }
  0xe9   : > { %v531_v0 = vpop.permute.xlu1 %530  ;;  %v1231_v11 = vpop.eup %1230 }
  0xea   : > { %v533_v5 = vmul.f32 %v1225_v63, %v531_v0  ;;  %v572_v16 = vmul.f32 %v1231_v11, %v570_v13  ;;  %v1233_v28 = vpop.eup %1232  ;;  %v357_v63 = vld [vmem:[%s1556_s27 + $0x18] sm:$0xff]  ;;  %v706_v7 = vpop.permute.xlu0 %705  ;;  %s328_s27 = scalar_lea.vmem [#allocation4], %s1725_s12 }
  0xeb   : > { %1195 = vset.pattern.permute.xlu1 %v1411_v37  ;;  %v695_v8 = vperm.slane %v357_v63, 0  ;;  %v734_v29 = vperm.slane %v357_v63, 3  ;;  %s879_s28 = sshll.u32 %s328_s27, 4  ;;  %s880_s28 = int_to_ptr.vmem [resolvable:$true] %s879_s28 }
  0xec   : > { %v534_v6 = vadd.f32 %v533_v5, %v521_v52  ;;  %738 = vperm.xlu1 %1195, %v1522_v4  }
  0xed   : > { %1196 = vset.pattern.permute.xlu2 %v1413_v45 }
  0xee   : > { %751 = vperm.xlu2 %1196, %v1522_v4   ;;  %v583_v26 = vpop.permute.xlu2 %582 }
  0xef   : > { %v585_v31 = vmul.f32 %v1233_v28, %v583_v26 }
  0xf2   : > { %v544_v9 = vpop.permute.xlu1 %543  ;;  %v687_v28 = vpop.permute.xlu0 %686 }
  0xf3   : > { %v546_v10 = vmul.f32 %v1227_v3, %v544_v9 }
  0xf4   : > { %1198 = vset.pattern.permute.xlu1 %v1408_v18  ;;  %v592_v18 = vadd.f32 %v591_v25, %v589_v56  ;;  %v656_v56 = vperm.slane %v356_v23, 5 }
  0xf5   : > { %v547_v15 = vadd.f32 %v546_v10, %v534_v6  ;;  %777 = vperm.xlu1 %1198, %v1522_v4   ;;  %v708_v10 = vperm.slane %v357_v63, 1 }
  0xf6   : > { %1199 = vset.pattern.permute.xlu2 %v1412_v38  ;;  %1234 = vtanh.f32 %v592_v18 }
  0xf7   : > { %v560_v19 = vadd.f32 %v559_v14, %v547_v15  ;;  %790 = vperm.xlu2 %1199, %v1522_v4   ;;  %v654_v30 = vpop.permute.xlu2 %653  ;;  %1236 = vtanh.f32 %v605_v33 }
  0xf8   : > { %v657_v32 = vadd.f32 %v656_v56, %v654_v30 }
  0xf9   : > { %v573_v17 = vadd.f32 %v572_v16, %v560_v19 }
  0xfb   : > { %v615_v22 = vpop.permute.xlu1 %614  ;;  %v586_v4 = vadd.f32 %v585_v31, %v573_v17  ;;  %v709_v17 = vadd.f32 %v708_v10, %v706_v7  ;;  %v747_v31 = vperm.slane %v357_v63, 4  ;;  %v375_v10 = vld [vmem:[%s1641_s16 + $0x78] sm:$0xff] }
  0xfc   : > { %v1235_v34 = vpop.eup %1234  ;;  %v618_v49 = vadd.f32 %v617_v47, %v615_v22  ;;  %v721_v22 = vperm.slane %v357_v63, 2  ;;  %823 = vmatpush.msra.mxu0 %v375_v10 }
  0xfd   : > { %v1237_v37 = vpop.eup %1236 }
  0xfe   : > { %1238 = vtanh.f32 %v618_v49 }
 0x100   : > { %v667_v36 = vpop.permute.xlu2 %666 }
 0x101   : > { %v670_v60 = vadd.f32 %v669_v58, %v667_v36  ;;  %v760_v36 = vperm.slane %v357_v63, 5 }
 0x104   : > { %v628_v27 = vpop.permute.xlu1 %627  ;;  %v1239_v59 = vpop.eup %1238 }
 0x105   : > { %v631_v53 = vadd.f32 %v630_v50, %v628_v27  ;;  %v624_v62 = vmul.f32 %v1239_v59, %v622_v57 }
 0x107   : > { %1240 = vtanh.f32 %v631_v53 }
 0x108   : > { %1242 = vtanh.f32 %v644_v55 }
 0x109   : > { %v635_v41 = vpop.permute.xlu2 %634  ;;  %1244 = vtanh.f32 %v657_v32 }
 0x10a   : > { %1246 = vtanh.f32 %v670_v60 }
 0x10d   : > { %v596_v35 = vpop.permute.xlu1 %595  ;;  %v1241_v2 = vpop.eup %1240 }
 0x10e   : > { %v598_v20 = vmul.f32 %v1235_v34, %v596_v35  ;;  %v1243_v6 = vpop.eup %1242  ;;  %v637_v9 = vmul.f32 %v1241_v2, %v635_v41  ;;  %v773_v41 = vperm.slane %v357_v63, 6 }
 0x10f   : > { %v1245_v14 = vpop.eup %1244 }
 0x110   : > { %v599_v12 = vadd.f32 %v598_v20, %v586_v4  ;;  %v1247_v21 = vpop.eup %1246 }
 0x112   : > { %v648_v43 = vpop.permute.xlu2 %647 }
 0x113   : > { %v650_v13 = vmul.f32 %v1243_v6, %v648_v43  ;;  %v359_v6 = vld [vmem:[%s347_s8] sm:$0xff]  ;;  %s851_s8 = scalar_lea.sflag [#allocation5], %s1660_s11 }
 0x114   : > { %vm795_vm0 = vcmp.eq.f32.partialorder %v359_v6, 0.0 }
 0x116   : > { %v609_v38 = vpop.permute.xlu1 %608 }
 0x117   : > { %v611_v39 = vmul.f32 %v1237_v37, %v609_v38 }
 0x119   : > { %v612_v40 = vadd.f32 %v611_v39, %v599_v12 }
 0x11b   : > { %v719_v45 = vpop.permute.xlu2 %718  ;;  %v625_v5 = vadd.f32 %v624_v62, %v612_v40  ;;  %v786_v40 = vperm.slane %v357_v63, 7 }
 0x11c   : > { %v722_v27 = vadd.f32 %v721_v22, %v719_v45  ;;  %v771_v45 = vpop.permute.xlu0 %770 }
 0x11d   : > { %v638_v11 = vadd.f32 %v637_v9, %v625_v5  ;;  %v774_v48 = vadd.f32 %v773_v41, %v771_v45 }
 0x11f   : > { %v680_v42 = vpop.permute.xlu1 %679  ;;  %v651_v24 = vadd.f32 %v650_v13, %v638_v11  ;;  %v374_v11 = vld [vmem:[%s1641_s16 + $0x70] sm:$0xff]  ;;  %v373_v13 = vld [vmem:[%s1641_s16 + $0x68] sm:$0xff] }
 0x120   : > { %v683_v3 = vadd.f32 %v682_v61, %v680_v42  ;;  %824 = vmatpush.msra.mxu0 %v374_v11 }
 0x122   : > { %1248 = vtanh.f32 %v683_v3  ;;  %825 = vmatpush.msra.mxu0 %v373_v13 }
 0x124   : > { %v732_v52 = vpop.permute.xlu2 %731  ;;  %v765_v32 = vpop.permute.xlu0 %764 }
 0x125   : > { %v735_v35 = vadd.f32 %v734_v29, %v732_v52  ;;  %v365_v29 = vld [vmem:[%s1641_s16 + $0x28] sm:$0xff] }
 0x128   : > { %v693_v44 = vpop.permute.xlu1 %692  ;;  %v1249_v18 = vpop.eup %1248 }
 0x129   : > { %v696_v15 = vadd.f32 %v695_v8, %v693_v44  ;;  %v689_v33 = vmul.f32 %v1249_v18, %v687_v28  ;;  %v368_v18 = vld [vmem:[%s1641_s16 + $0x40] sm:$0xff]  ;;  %v366_v28 = vld [vmem:[%s1641_s16 + $0x30] sm:$0xff] }
 0x12b   : > { %1250 = vtanh.f32 %v696_v15  ;;  %v371_v15 = vld [vmem:[%s1641_s16 + $0x58] sm:$0xff] }
 0x12c   : > { %1252 = vtanh.f32 %v709_v17  ;;  %v802_v17 = vlaneseq }
 0x12d   : > { %v700_v0 = vpop.permute.xlu2 %699  ;;  %1254 = vtanh.f32 %v722_v27  ;;  %v367_v27 = vld [vmem:[%s1641_s16 + $0x38] sm:$0xff] }
 0x12e   : > { %1256 = vtanh.f32 %v735_v35  ;;  %v360_v35 = vld [vmem:[%s1641_s16] sm:$0xff] }
 0x131   : > { %v661_v46 = vpop.permute.xlu1 %660  ;;  %v1251_v34 = vpop.eup %1250 }
 0x132   : > { %v663_v16 = vmul.f32 %v1245_v14, %v661_v46  ;;  %v1253_v38 = vpop.eup %1252  ;;  %v702_v39 = vmul.f32 %v1251_v34, %v700_v0  ;;  %v372_v14 = vld [vmem:[%s1641_s16 + $0x60] sm:$0xff]  ;;  %v361_v34 = vld [vmem:[%s1641_s16 + $0x8] sm:$0xff] }
 0x133   : > { %v1255_v46 = vpop.eup %1254  ;;  %826 = vmatpush.msra.mxu0 %v372_v14 }
 0x134   : > { %v664_v26 = vadd.f32 %v663_v16, %v651_v24  ;;  %v1257_v51 = vpop.eup %1256  ;;  %v370_v16 = vld [vmem:[%s1641_s16 + $0x50] sm:$0xff] }
 0x135   : > { %827 = vmatpush.msra.mxu0 %v371_v15 }
 0x136   : > { %v713_v19 = vpop.permute.xlu2 %712 }
 0x137   : > { %v715_v43 = vmul.f32 %v1253_v38, %v713_v19  ;;  %828 = vmatpush.msra.mxu0 %v370_v16 }
 0x13a   : > { %v674_v54 = vpop.permute.xlu1 %673 }
 0x13b   : > { %v676_v25 = vmul.f32 %v1247_v21, %v674_v54 }
 0x13d   : > { %v677_v30 = vadd.f32 %v676_v25, %v664_v26  ;;  %v369_v26 = vld [vmem:[%s1641_s16 + $0x48] sm:$0xff] }
 0x13e   : > { %829 = vmatpush.msra.mxu0 %v369_v26 }
 0x13f   : > { %v690_v4 = vadd.f32 %v689_v33, %v677_v30  ;;  %v784_v12 = vpop.permute.xlu2 %783  ;;  %v364_v30 = vld [vmem:[%s1641_s16 + $0x20] sm:$0xff]  ;;  %v362_v33 = vld [vmem:[%s1641_s16 + $0x10] sm:$0xff] }
 0x140   : > { %v787_v50 = vadd.f32 %v786_v40, %v784_v12  ;;  %830 = vmatpush.msra.mxu0 %v368_v18 }
 0x141   : > { %v703_v42 = vadd.f32 %v702_v39, %v690_v4 }
 0x142   : > { %831 = vmatpush.msra.mxu0 %v367_v27 }
 0x143   : > { %v745_v1 = vpop.permute.xlu1 %744  ;;  %v716_v49 = vadd.f32 %v715_v43, %v703_v42 }
 0x144   : > { %v748_v20 = vadd.f32 %v747_v31, %v745_v1  ;;  %832 = vmatpush.msra.mxu0 %v366_v28  ;;  %v363_v31 = vld [vmem:[%s1641_s16 + $0x18] sm:$0xff]  ;;  %s1290_s16 = scalar_lea.hbm %s1724_s6, 16 }
 0x145   : > { %p1292_p2 = scmp.lt.s32.totalorder %s1290_s16, %s1286_s14 }
 0x146   : > { %1258 = vtanh.f32 %v748_v20  ;;  %833 = vmatpush.msra.mxu0 %v365_v29 }
 0x147   : > { %p1293_p3 = por %p1292_p2, %p1291_p1 }
 0x148   : > { %v752_v54 = vpop.permute.xlu2 %751  ;;  %834 = vmatpush.msra.mxu0 %v364_v30 }
 0x149   : > { %p1294_p5 = pnand %p1293_p3, %p1289_p0 }
 0x14a   : > { %835 = vmatpush.msra.mxu0 %v363_v31 }
 0x14c   : > { %v758_v23 = vpop.permute.xlu1 %757  ;;  %v1259_v53 = vpop.eup %1258  ;;  %836 = vmatpush.msra.mxu0 %v362_v33 }
 0x14d   : > { %v761_v44 = vadd.f32 %v760_v36, %v758_v23  ;;  %v754_v58 = vmul.f32 %v1259_v53, %v752_v54  ;;  %v803_v23 = vand.u32 127, %v802_v17 }
 0x14e   : > { %837 = vmatpush.msra.mxu0 %v361_v34 }
 0x14f   : > { %1260 = vtanh.f32 %v761_v44  ;;  %vm804_vm1 = vcmp.lt.s32.totalorder %v803_v23, 8 }
 0x150   : > { %1262 = vtanh.f32 %v774_v48  ;;  %838 = vmatpush.msra.mxu0 %v360_v35 }
 0x151   : > { %1264 = vtanh.f32 %v787_v50  ;;  %v791_v0 = vpop.permute.xlu2 %790 }
 0x155   : > { %v726_v37 = vpop.permute.xlu1 %725  ;;  %v1261_v59 = vpop.eup %1260 }
 0x156   : > { %v728_v47 = vmul.f32 %v1255_v46, %v726_v37  ;;  %v1263_v61 = vpop.eup %1262  ;;  %v767_v62 = vmul.f32 %v1261_v59, %v765_v32 }
 0x157   : > { %v1265_v63 = vpop.eup %1264 }
 0x158   : > { %v729_v55 = vadd.f32 %v728_v47, %v716_v49  ;;  %v793_v3 = vmul.f32 %v1265_v63, %v791_v0 }
 0x15e   : > { %v739_v52 = vpop.permute.xlu1 %738 }
 0x15f   : > { %v741_v56 = vmul.f32 %v1257_v51, %v739_v52 }
 0x161   : > { %v742_v57 = vadd.f32 %v741_v56, %v729_v55 }
 0x163   : > { %v755_v60 = vadd.f32 %v754_v58, %v742_v57 }
 0x165   : > { %v768_v2 = vadd.f32 %v767_v62, %v755_v60 }
 0x167   : > { %v778_v1 = vpop.permute.xlu1 %777 }
 0x168   : > { %v780_v5 = vmul.f32 %v1263_v61, %v778_v1 }
 0x16a   : > { %v781_v7 = vadd.f32 %v780_v5, %v768_v2 }
 0x16c   : > { %v794_v8 = vadd.f32 %v793_v3, %v781_v7 }
 0x16e   : > { %v796_v9 = vsel %vm795_vm0, -1e+09, %v794_v8 }
 0x16f   : > { %797 = vmax.xlane.f32.xlu1 %v796_v9 }
 0x1e2   : > { %v798_v19 = vpop.xlane.xlu1 %797 }
 0x1e3   : > { %v799_v21 = vsub.f32 %v796_v9, %v798_v19 }
 0x1e5   : > { %v800_v22 = vmul.f32 1.442695, %v799_v21 }
 0x1e7   : > { %1266 = vpow2.f32 %v800_v22 }
 0x1ed   : > { %v1267_v24 = vpop.eup %1266 }
 0x1ee   : > { %v805_v25 = vsel %vm804_vm1, %v1267_v24, 0.0 }
 0x1ef   : > { %806 = vadd.xlane.f32.xlu2 %v805_v25 }
 0x262   : > { %v807_v4 = vpop.xlane.xlu2 %806 }
 0x263   : > { %1268 = vrcp.f32 %v807_v4  ;;  %v819_v37 = vand.u32 2147483648, %v807_v4  ;;  %v817_v39 = vand.u32 2147483647, %v807_v4  ;;  %vm813_vm3 = vweird.f32 %v807_v4 }
 0x265   : > { %v820_v41 = vor.u32 1.1754944e-38, %v819_v37  ;;  %vm818_vm5 = vcmp.eq.f32.partialorder %v817_v39, 8.507059e+37 }
 0x269   : > { %v1269_v20 = vpop.eup %1268 }
 0x26a   : > { %v809_v12 = vmul.f32 %v1269_v20, %v807_v4  ;;  %vm814_vm2 = vweird.f32 %v1269_v20 }
 0x26b   : > { %vm815_vm4 = vmor %vm813_vm3, %vm814_vm2 }
 0x26c   : > { %v810_v36 = vsub.f32 1.0, %v809_v12 }
 0x26e   : > { %v811_v38 = vmul.f32 %v1269_v20, %v810_v36 }
 0x270   : > { %v812_v40 = vadd.f32 %v1269_v20, %v811_v38 }
 0x272   : > { %v816_v42 = vsel %vm815_vm4, %v1269_v20, %v812_v40 }
 0x273   : > { %v821_v43 = vsel %vm818_vm5, %v820_v41, %v816_v42 }
 0x274   : > { %v822_v44 = vmul.f32 %v821_v43, %v805_v25 }
 0x276   : > { %839 = vmatmul.f32.vlgmr.msra.gmra.mxu0 %v822_v44  ;;  %844 = vst [vmem:[%s328_s27] sm:$0xff] %v822_v44 }
 0x277   : > { %1297 = shalt.err (!%p1294_p5)
}
 0x278   : > { %1048 = dma.vmem_to_hbm [thread:$0]  (%p1489_p4), %s880_s28, 128, %s882_s30, %s851_s8  }
 0x279   : > { %s862_s12 = scalar_lea.hbm %s1723_s5, %s1041_s17  ;;  %s1732_s24 = sshll.u32 %s1660_s11, 3 }
 0x27a   : > { %s321_s15 = scalar_lea.vmem [#allocation2], %s1732_s24  ;;  %s866_s1 = sshll.u32 %s862_s12, 4  ;;  %s867_s1 = int_to_ptr.hbm [resolvable:$true] %s866_s1 }
 0x27b   : > { %s864_s0 = sshll.u32 %s321_s15, 4  ;;  %s846_s13 = scalar_lea.sflag [#allocation3], %s1660_s11  ;;  %s865_s0 = int_to_ptr.vmem [resolvable:$true] %s864_s0 }
 0x27c   : > { %s1312_s14 = sshra.s32 %s867_s1, 4  ;;  %s1318_s17 = scalar_lea.hbm %s1723_s5, 16  ;;  %s1313_s14 = int_to_ptr.hbm [resolvable:$true] %s1312_s14 }
 0x27d   : > { %s1314_s16 = scalar_lea.hbm %s1313_s14, 8  ;;  %p1319_p10 = scmp.lt.s32.totalorder %s1313_s14, %s1723_s5 }
 0x27e   : > { %p1315_p6 = scmp.ne.s32.totalorder %s1313_s14, %s1314_s16  ;;  %p1320_p11 = scmp.lt.s32.totalorder %s1318_s17, %s1314_s16 }
 0x280   : > { %p1316_p7 = pnand %p1315_p6, %p1489_p4  ;;  %p1321_p12 = por %p1320_p11, %p1319_p10 }
 0x282   : > { %p1317_p9 = pneg %p1316_p7 }
 0x284   : > { %p1322_p13 = pnand %p1321_p12, %p1317_p9 }
 0x2f3   : > { %v840_v45 = vpop.f32.mrf.mxu0 }
 0x2f4   : > { %843 = vst [vmem:[%s321_s15] sm:$0xff] %v840_v45 }
 0x2f5   : > { %1325 = shalt.err (!%p1322_p13)
}
 0x2f6   : > { %1047 = dma.vmem_to_hbm [thread:$0]  (%p1489_p4), %s865_s0, 128, %s867_s1, %s846_s13  }
 0x2f7 PF: > { %p1058_p0 = scmp.ge.s32.totalorder %s1380_s26, 2  ;;  %s893_s11 = sand.u32 1, %s1360_s21  }
 0x2f8   : > { %s894_s12 = scalar_lea.sflag [#allocation3], %s893_s11 }
 0x2f9   : > { %p1052_p1 = pnand %p1058_p0, %p1496_p8 }
 0x2fb   : > { %p1053_p2 = pneg %p1052_p1 }
 0x2fd   : > { %1351 = dma.done.wait (%p1053_p2), %s894_s12, 128  }
 0x2fe   : > { %1353 = vsyncadd (%p1053_p2), %s894_s12, 4294967168  ;;  %s904_s19 = scalar_lea.sflag [#allocation5], %s893_s11 }
 0x2ff   : > { %1355 = dma.done.wait (%p1053_p2), %s904_s19, 128  }
 0x300   : > { %1357 = vsyncadd (%p1053_p2), %s904_s19, 4294967168  ;;  %s23_s26 = sadd.s32 1, %s1380_s26   ;;  %s1733_s21 = smov %s1364_s22 }
 0x301   : > { %p20_p3 = scmp.ge.s32.totalorder %s23_s26, 4   ;;  %s1734_s22 = smov %s1368_s23 }
 0x302   : > { %s1735_s23 = smov %s1502_s10  ;;  %s1736_s24 = smov %s1376_s25 }
 0x303   : > { %s1737_s25 = smov %s1739_s29  ;;  %22 = sbr.rel (!%p20_p3) target bundleno = 9 (0x9), region = 101 }
 0x308   :  { %910 = vsyncpa [#allocation3], 1 }
 0x309   :  { %912 = vsyncpa [#allocation3 + $0x1], 1 }
 0x30a   :  { %913 = vsyncpa [#allocation5], 1 }
 0x30b   :  { %915 = vsyncpa [#allocation5 + $0x1], 1 }

</bundles_post_ra>
